<compile_context>
chip_gen: v5e
topology: v5e:2x2
jax: 0.10.0
libtpu: 0.0.40
codegen_flags: <defaults>
</compile_context>

<pallas_src>
import functools
import math

import jax
import jax.numpy as jnp
from jax.experimental import pallas as pl
from jax.experimental.pallas import tpu as pltpu


# ----------------------------- tiling helpers ------------------------------

def _fit(dim, target):
    """Largest tile size <= target that exactly divides dim."""
    if dim <= target:
        return dim
    for t in range(target, 0, -1):
        if dim % t == 0:
            return t
    return dim


_VMEM_LIMIT = 32 * 1024 * 1024  # safe on v5e/v6e/v7x; raises v5e's 16MiB default


# ----------------------------- Pallas kernels ------------------------------

def _matmul_bias_kernel(x_ref, w_ref, b_ref, o_ref, acc_ref, *, activation):
    # x, w are bf16; accumulate in f32; bias / activation epilogue in f32.
    k = pl.program_id(2)

    @pl.when(k == 0)
    def _():
        acc_ref[...] = jnp.zeros_like(acc_ref)

    acc_ref[...] += jnp.dot(x_ref[...], w_ref[...],
                            preferred_element_type=jnp.float32)

    @pl.when(k == pl.num_programs(2) - 1)
    def _():
        y = acc_ref[...] + b_ref[...]            # b is [1, tn] f32, broadcasts
        if activation == "relu":
            y = jnp.maximum(y, 0.0)
        o_ref[...] = y.astype(o_ref.dtype)


def _matmul_bias_add_ln_kernel(x_ref, w_ref, b_ref, res_ref, g_ref, bl_ref,
                               o_ref, acc_ref, *, eps):
    # matmul (bf16 operands, f32 acc) + bias + residual add + LayerNorm.
    # NOTE: correctness requires the full feature dim N resident per block
    # (mean/var over the last axis); N is never tiled in this wrapper.
    k = pl.program_id(1)

    @pl.when(k == 0)
    def _():
        acc_ref[...] = jnp.zeros_like(acc_ref)

    acc_ref[...] += jnp.dot(x_ref[...], w_ref[...],
                            preferred_element_type=jnp.float32)

    @pl.when(k == pl.num_programs(1) - 1)
    def _():
        y = acc_ref[...] + b_ref[...] + res_ref[...].astype(jnp.float32)
        mu = jnp.mean(y, axis=-1, keepdims=True)
        var = jnp.mean((y - mu) ** 2, axis=-1, keepdims=True)
        y = (y - mu) * jax.lax.rsqrt(var + eps) * g_ref[...] + bl_ref[...]
        o_ref[...] = y.astype(o_ref.dtype)


def _attn_kernel(*refs, scale, n_head, dh, has_mask, self_attn):
    # Per-batch tile; heads sliced from the fused projection in-kernel
    # (lane-contiguous slices), output merged lane-dense to [Sq, H*Dh].
    d = n_head * dh
    if self_attn:
        qkv = refs[0][0]                        # [Sq, 3D] bf16
        nxt = 1
        q_all = qkv[:, 0:d]
        k_all = qkv[:, d:2 * d]
        v_all = qkv[:, 2 * d:3 * d]
    else:
        q_all = refs[0][0]                      # [Sq, D] bf16
        kv = refs[1][0]                         # [Sk, 2D] bf16
        nxt = 2
        k_all = kv[:, 0:d]
        v_all = kv[:, d:2 * d]
    if has_mask:
        mask = refs[nxt][0]                     # [Sq, Sk] f32, shared over heads
        nxt += 1
    o_ref = refs[nxt]

    outs = []
    for h in range(n_head):                     # static unrolled head loop
        sl = slice(h * dh, (h + 1) * dh)
        qh = q_all[:, sl]
        kh = k_all[:, sl]
        vh = v_all[:, sl]
        # contract on the head dim directly (no transposed-K materialization)
        s = jax.lax.dot_general(qh, kh, (((1,), (1,)), ((), ())),
                                preferred_element_type=jnp.float32) * scale
        if has_mask:
            s = jnp.where(mask > 0.0, s, -10000.0)   # masked_fill(mask==0)
        s = s - jnp.max(s, axis=-1, keepdims=True)
        p = jnp.exp(s)
        p = p * pl.reciprocal(jnp.sum(p, axis=-1, keepdims=True), approx=True)
        outs.append(jnp.dot(p.astype(vh.dtype), vh,
                            preferred_element_type=jnp.float32))
    o_ref[0] = jnp.concatenate(outs, axis=-1).astype(o_ref.dtype)


# ----------------------------- Pallas wrappers ------------------------------

def pallas_linear(x2d, w, b, activation=None, out_dtype=jnp.bfloat16,
                  tm=256, tn=256, tk=512):
    M, K = x2d.shape
    N = w.shape[1]
    tm, tn, tk = _fit(M, tm), _fit(N, tn), _fit(K, tk)
    b2d = b.reshape(1, N)
    return pl.pallas_call(
        functools.partial(_matmul_bias_kernel, activation=activation),
        out_shape=jax.ShapeDtypeStruct((M, N), out_dtype),
        grid=(M // tm, N // tn, K // tk),
        in_specs=[
            pl.BlockSpec((tm, tk), lambda i, j, k: (i, k)),
            pl.BlockSpec((tk, tn), lambda i, j, k: (k, j)),
            pl.BlockSpec((1, tn), lambda i, j, k: (0, j)),
        ],
        out_specs=pl.BlockSpec((tm, tn), lambda i, j, k: (i, j)),
        scratch_shapes=[pltpu.VMEM((tm, tn), jnp.float32)],
        compiler_params=pltpu.CompilerParams(
            dimension_semantics=("parallel", "parallel", "arbitrary"),
            vmem_limit_bytes=_VMEM_LIMIT),
    )(x2d, w, b2d)


def pallas_linear_add_ln(x2d, w, b, res2d, gamma, beta, eps=1e-5,
                         tm=128, tk=512):
    # y = LayerNorm(x2d @ w + b + res2d) — fused epilogue, full N per block.
    M, K = x2d.shape
    N = w.shape[1]
    tm, tk = _fit(M, tm), _fit(K, tk)
    b2d = b.reshape(1, N)
    g2d = gamma.reshape(1, N)
    bl2d = beta.reshape(1, N)
    return pl.pallas_call(
        functools.partial(_matmul_bias_add_ln_kernel, eps=eps),
        out_shape=jax.ShapeDtypeStruct((M, N), jnp.bfloat16),
        grid=(M // tm, K // tk),
        in_specs=[
            pl.BlockSpec((tm, tk), lambda i, k: (i, k)),
            pl.BlockSpec((tk, N), lambda i, k: (k, 0)),
            pl.BlockSpec((1, N), lambda i, k: (0, 0)),
            pl.BlockSpec((tm, N), lambda i, k: (i, 0)),
            pl.BlockSpec((1, N), lambda i, k: (0, 0)),
            pl.BlockSpec((1, N), lambda i, k: (0, 0)),
        ],
        out_specs=pl.BlockSpec((tm, N), lambda i, k: (i, 0)),
        scratch_shapes=[pltpu.VMEM((tm, N), jnp.float32)],
        compiler_params=pltpu.CompilerParams(
            dimension_semantics=("parallel", "arbitrary"),
            vmem_limit_bytes=_VMEM_LIMIT),
    )(x2d, w, b2d, res2d, g2d, bl2d)


def _attn_call(args, in_specs, B, Sq, D, scale, n_head, dh, has_mask, self_attn):
    return pl.pallas_call(
        functools.partial(_attn_kernel, scale=scale, n_head=n_head, dh=dh,
                          has_mask=has_mask, self_attn=self_attn),
        out_shape=jax.ShapeDtypeStruct((B, Sq, D), jnp.bfloat16),
        grid=(B,),
        in_specs=in_specs,
        out_specs=pl.BlockSpec((1, Sq, D), lambda b: (b, 0, 0)),
        compiler_params=pltpu.CompilerParams(dimension_semantics=("parallel",)),
    )(*args)


def pallas_attention_self(qkv, mask2d, n_head):
    # qkv: [B, S, 3D] bf16 (fused projection); mask2d: [S, S] f32 or None
    B, Sq, D3 = qkv.shape
    D = D3 // 3
    dh = D // n_head
    scale = 1.0 / math.sqrt(dh)
    has_mask = mask2d is not None
    in_specs = [pl.BlockSpec((1, Sq, D3), lambda b: (b, 0, 0))]
    args = [qkv]
    if has_mask:
        in_specs.append(pl.BlockSpec((1, Sq, Sq), lambda b: (0, 0, 0)))
        args.append(mask2d.reshape(1, Sq, Sq))
    return _attn_call(args, in_specs, B, Sq, D, scale, n_head, dh,
                      has_mask, True)


def pallas_attention_cross(q, kv, mask2d, n_head):
    # q: [B, Sq, D] bf16; kv: [B, Sk, 2D] bf16; mask2d: [Sq, Sk] f32 or None
    B, Sq, D = q.shape
    Sk = kv.shape[1]
    dh = D // n_head
    scale = 1.0 / math.sqrt(dh)
    has_mask = mask2d is not None
    in_specs = [
        pl.BlockSpec((1, Sq, D), lambda b: (b, 0, 0)),
        pl.BlockSpec((1, Sk, 2 * D), lambda b: (b, 0, 0)),
    ]
    args = [q, kv]
    if has_mask:
        in_specs.append(pl.BlockSpec((1, Sq, Sk), lambda b: (0, 0, 0)))
        args.append(mask2d.reshape(1, Sq, Sk))
    return _attn_call(args, in_specs, B, Sq, D, scale, n_head, dh,
                      has_mask, False)


# ----------------------------- model definition -----------------------------

def sinusoidal_pe(max_len, d_model, base):
    pos = jnp.arange(max_len, dtype=jnp.float32)[:, None]
    two_i = jnp.arange(0, d_model, 2, dtype=jnp.float32)[None, :]
    angle = pos / jnp.power(float(base), two_i / d_model)
    pe = jnp.zeros((max_len, d_model), jnp.float32)
    pe = pe.at[:, 0::2].set(jnp.sin(angle))
    pe = pe.at[:, 1::2].set(jnp.cos(angle))
    return pe


def _init_linear(key, fan_in, fan_out):
    kw, kb = jax.random.split(key)
    w = jax.random.normal(kw, (fan_in, fan_out), jnp.float32) * 0.02
    b = jax.random.normal(kb, (fan_out,), jnp.float32) * 0.02
    return w, b


def init_decoder_params(key, vocab_size, d_model, max_len, base, n_head,
                        ffn_hidden, n_layers):
    """All weight fusion (QKV / KV concat) and bf16 casting done ONCE here."""
    bf = jnp.bfloat16
    keys = jax.random.split(key, 2 + n_layers)
    params = {
        "emb": jax.random.normal(keys[0], (vocab_size, d_model), jnp.float32) * 0.02,
        "pe": sinusoidal_pe(max_len, d_model, base),
        "layers": [],
    }
    for l in range(n_layers):
        lk = jax.random.split(keys[1 + l], 10)
        layer = {}

        # self-attention: fused [D, 3D] QKV
        wq, bq = _init_linear(lk[0], d_model, d_model)
        wk, bk = _init_linear(lk[1], d_model, d_model)
        wv, bv = _init_linear(lk[2], d_model, d_model)
        wo, bo = _init_linear(lk[3], d_model, d_model)
        layer["self"] = dict(
            wqkv=jnp.concatenate([wq, wk, wv], axis=1).astype(bf),
            bqkv=jnp.concatenate([bq, bk, bv], axis=0),
            wo=wo.astype(bf), bo=bo)

        # cross-attention: Q alone, fused [D, 2D] KV
        wq, bq = _init_linear(lk[4], d_model, d_model)
        wk, bk = _init_linear(lk[5], d_model, d_model)
        wv, bv = _init_linear(lk[6], d_model, d_model)
        wo, bo = _init_linear(lk[7], d_model, d_model)
        layer["cross"] = dict(
            wq=wq.astype(bf), bq=bq,
            wkv=jnp.concatenate([wk, wv], axis=1).astype(bf),
            bkv=jnp.concatenate([bk, bv], axis=0),
            wo=wo.astype(bf), bo=bo)

        w1, b1 = _init_linear(lk[8], d_model, ffn_hidden)
        w2, b2 = _init_linear(lk[9], ffn_hidden, d_model)
        layer["ffn"] = dict(w1=w1.astype(bf), b1=b1, w2=w2.astype(bf), b2=b2)

        for n in ("ln1", "ln2", "ln3"):
            layer[n + "_g"] = jnp.ones((d_model,), jnp.float32)
            layer[n + "_b"] = jnp.zeros((d_model,), jnp.float32)
        params["layers"].append(layer)

    ow, ob = _init_linear(keys[-1], d_model, vocab_size)
    params["out_w"], params["out_b"] = ow.astype(bf), ob
    return params


def self_attention(p, x, mask, n_head):
    """Self-attention core (excl. output projection). x: [B,S,D] bf16."""
    B, S, D = x.shape
    qkv = pallas_linear(x.reshape(-1, D), p["wqkv"], p["bqkv"])   # [B*S, 3D] bf16
    qkv = qkv.reshape(B, S, 3 * D)
    mask2d = None if mask is None else mask.astype(jnp.float32).reshape(S, S)
    out = pallas_attention_self(qkv, mask2d, n_head)              # [B,S,D] bf16
    return out.reshape(B * S, D)


def cross_attention(p, x, enc, mask, n_head):
    """Cross-attention core. x: [B,Sq,D] bf16, enc: [B,Sk,D] bf16."""
    B, Sq, D = x.shape
    Sk = enc.shape[1]
    q = pallas_linear(x.reshape(-1, D), p["wq"], p["bq"]).reshape(B, Sq, D)
    kv = pallas_linear(enc.reshape(-1, D), p["wkv"], p["bkv"]).reshape(B, Sk, 2 * D)
    mask2d = None if mask is None else mask.astype(jnp.float32).reshape(Sq, Sk)
    out = pallas_attention_cross(q, kv, mask2d, n_head)            # [B,Sq,D] bf16
    return out.reshape(B * Sq, D)


def decoder_layer(p, x, enc, src_mask, tgt_mask, n_head):
    B, S, D = x.shape
    x2 = x.reshape(-1, D)                                          # bf16

    # 1) masked self-attention -> fused output-proj + add & norm
    a = self_attention(p["self"], x, tgt_mask, n_head)
    x2 = pallas_linear_add_ln(a, p["self"]["wo"], p["self"]["bo"],
                              x2, p["ln1_g"], p["ln1_b"])

    # 2) encoder-decoder cross attention -> fused output-proj + add & norm
    if enc is not None:
        a = cross_attention(p["cross"], x2.reshape(B, S, D), enc, src_mask, n_head)
        x2 = pallas_linear_add_ln(a, p["cross"]["wo"], p["cross"]["bo"],
                                  x2, p["ln2_g"], p["ln2_b"])

    # 3) position-wise FFN, second matmul fused with add & norm
    h = pallas_linear(x2, p["ffn"]["w1"], p["ffn"]["b1"], activation="relu")
    x2 = pallas_linear_add_ln(h, p["ffn"]["w2"], p["ffn"]["b2"],
                              x2, p["ln3_g"], p["ln3_b"])
    return x2.reshape(B, S, D)


def decoder_forward(params, tgt, enc, src_mask, tgt_mask, n_head):
    B, S = tgt.shape
    D = params["emb"].shape[1]
    V = params["out_w"].shape[1]

    # TransformerEmbedding: token gather + sinusoidal PE add (f32), then bf16
    tok = jnp.take(params["emb"], tgt, axis=0)                     # [B,S,D]
    x = (tok + params["pe"][:S][None, :, :]).astype(jnp.bfloat16)
    enc_bf = None if enc is None else enc.astype(jnp.bfloat16)

    for layer in params["layers"]:
        x = decoder_layer(layer, x, enc_bf, src_mask, tgt_mask, n_head)

    # output projection: full-dim N block (no vocab padding, no logits slice)
    logits = pallas_linear(x.reshape(B * S, D), params["out_w"], params["out_b"],
                           out_dtype=jnp.float32)
    return logits.reshape(B, S, V)


# ----------------------------------- main ------------------------------------

if __name__ == "__main__":
    vocab_size = 50
    d_model = 32
    max_len = 16
    n_head = 4
    ffn_hidden = 64
    n_layers = 2
    base = 10000

    B, S_tgt, S_enc = 2, 8, 12

    key = jax.random.PRNGKey(0)
    k_params, k_tok, k_enc = jax.random.split(key, 3)

    params = init_decoder_params(k_params, vocab_size, d_model, max_len,
                                 base, n_head, ffn_hidden, n_layers)

    tgt = jax.random.randint(k_tok, (B, S_tgt), 0, vocab_size, dtype=jnp.int32)
    enc = jax.random.normal(k_enc, (B, S_enc, d_model), jnp.float32)

    # causal target mask [1,1,S,S]; src_mask = None (attend everywhere)
    tgt_mask = jnp.tril(jnp.ones((S_tgt, S_tgt), jnp.float32))[None, None]
    src_mask = None

    fwd = jax.jit(decoder_forward, static_argnames=("n_head",))
    out = fwd(params, tgt, enc, src_mask, tgt_mask, n_head=n_head)
    out = jax.block_until_ready(out)
    assert out.shape == (B, S_tgt, vocab_size)
    assert jnp.all(jnp.isfinite(out))
    print("KERNEL_OK")
</pallas_src>

<mosaic_0001>
module attributes {stable_mosaic.version = 11 : i64} {
  func.func @_matmul_bias_kernel(%arg0: i32, %arg1: i32, %arg2: i32, %arg3: memref<16x32xbf16, #tpu.memory_space<vmem>>, %arg4: memref<32x96xbf16, #tpu.memory_space<vmem>>, %arg5: memref<1x96xf32, #tpu.memory_space<vmem>>, %arg6: memref<16x96xbf16, #tpu.memory_space<vmem>>, %arg7: memref<16x96xf32, #tpu.memory_space<vmem>>) attributes {dimension_semantics = [#tpu.dimension_semantics<parallel>, #tpu.dimension_semantics<parallel>, #tpu.dimension_semantics<arbitrary>], iteration_bounds = array<i64: 1, 1, 1>, scalar_prefetch = 0 : i64, scratch_operands = 1 : i64, tpu.core_type = #tpu.core_type<tc>, window_params = [{transform_indices = @transform_0, window_bounds = array<i64: 16, 32>}, {transform_indices = @transform_1, window_bounds = array<i64: 32, 96>}, {transform_indices = @transform_2, window_bounds = array<i64: 1, 96>}, {transform_indices = @transform_3, window_bounds = array<i64: 16, 96>}]} {
    %c0_i32 = arith.constant 0 : i32
    %0 = arith.cmpi eq, %arg2, %c0_i32 : i32
    %1 = arith.extui %0 : i1 to i32
    %c0_i32_0 = arith.constant 0 : i32
    %2 = arith.cmpi ne, %1, %c0_i32_0 : i32
    scf.if %2 {
      %cst_10 = arith.constant 0.000000e+00 : f32
      %12 = vector.broadcast %cst_10 : f32 to vector<16x96xf32>
      %c0_11 = arith.constant 0 : index
      %c0_12 = arith.constant 0 : index
      %13 = vector.load %arg7[%c0_11, %c0_12] : memref<16x96xf32, #tpu.memory_space<vmem>>, vector<16x96xf32>
      tpu.vector_store %arg7[%c0_11, %c0_12], %12 {strides = array<i32>} : memref<16x96xf32, #tpu.memory_space<vmem>>, vector<16x96xf32>,
    } else {
    }
    %c0 = arith.constant 0 : index
    %c0_1 = arith.constant 0 : index
    %3 = vector.load %arg7[%c0, %c0_1] : memref<16x96xf32, #tpu.memory_space<vmem>>, vector<16x96xf32>
    %c0_2 = arith.constant 0 : index
    %c0_3 = arith.constant 0 : index
    %4 = vector.load %arg3[%c0_2, %c0_3] : memref<16x32xbf16, #tpu.memory_space<vmem>>, vector<16x32xbf16>
    %c0_4 = arith.constant 0 : index
    %c0_5 = arith.constant 0 : index
    %5 = vector.load %arg4[%c0_4, %c0_5] : memref<32x96xbf16, #tpu.memory_space<vmem>>, vector<32x96xbf16>
    %cst = arith.constant dense<0.000000e+00> : vector<16x96xf32>
    %6 = tpu.matmul %4, %5, %cst {dimension_numbers = #tpu.dot_dimension_numbers<[1], [0], [0], [1], [0, 0, 1, 1], [], []>} : vector<16x32xbf16>, vector<32x96xbf16>, vector<16x96xf32> -> vector<16x96xf32>
    %7 = arith.addf %3, %6 : vector<16x96xf32>
    %c0_6 = arith.constant 0 : index
    %c0_7 = arith.constant 0 : index
    %8 = vector.load %arg7[%c0_6, %c0_7] : memref<16x96xf32, #tpu.memory_space<vmem>>, vector<16x96xf32>
    tpu.vector_store %arg7[%c0_6, %c0_7], %7 {strides = array<i32>} : memref<16x96xf32, #tpu.memory_space<vmem>>, vector<16x96xf32>,
    %c0_i32_8 = arith.constant 0 : i32
    %9 = arith.cmpi eq, %arg2, %c0_i32_8 : i32
    %10 = arith.extui %9 : i1 to i32
    %c0_i32_9 = arith.constant 0 : i32
    %11 = arith.cmpi ne, %10, %c0_i32_9 : i32
    scf.if %11 {
      %c0_10 = arith.constant 0 : index
      %c0_11 = arith.constant 0 : index
      %12 = vector.load %arg7[%c0_10, %c0_11] : memref<16x96xf32, #tpu.memory_space<vmem>>, vector<16x96xf32>
      %c0_12 = arith.constant 0 : index
      %c0_13 = arith.constant 0 : index
      %13 = vector.load %arg5[%c0_12, %c0_13] : memref<1x96xf32, #tpu.memory_space<vmem>>, vector<1x96xf32>
      %14 = vector.broadcast %13 : vector<1x96xf32> to vector<16x96xf32>
      %15 = arith.addf %12, %14 : vector<16x96xf32>
      %16 = arith.truncf %15 : vector<16x96xf32> to vector<16x96xbf16>
      %c0_14 = arith.constant 0 : index
      %c0_15 = arith.constant 0 : index
      %17 = vector.load %arg6[%c0_14, %c0_15] : memref<16x96xbf16, #tpu.memory_space<vmem>>, vector<16x96xbf16>
      tpu.vector_store %arg6[%c0_14, %c0_15], %16 {strides = array<i32>} : memref<16x96xbf16, #tpu.memory_space<vmem>>, vector<16x96xbf16>,
    } else {
    }
    return
  }
  func.func @transform_0(%arg0: i32, %arg1: i32, %arg2: i32) -> (i32, i32) {
    %c0_i32 = arith.constant 0 : i32
    return %arg0, %arg2 : i32, i32
  }
  func.func @transform_1(%arg0: i32, %arg1: i32, %arg2: i32) -> (i32, i32) {
    %c0_i32 = arith.constant 0 : i32
    return %arg2, %arg1 : i32, i32
  }
  func.func @transform_2(%arg0: i32, %arg1: i32, %arg2: i32) -> (i32, i32) {
    %c0_i32 = arith.constant 0 : i32
    %c0_i32_0 = arith.constant 0 : i32
    return %c0_i32, %arg1 : i32, i32
  }
  func.func @transform_3(%arg0: i32, %arg1: i32, %arg2: i32) -> (i32, i32) {
    %c0_i32 = arith.constant 0 : i32
    return %arg0, %arg1 : i32, i32
  }
}

module attributes {stable_mosaic.version = 11 : i64} {
  func.func @_attn_kernel(%arg0: i32, %arg1: memref<1x8x96xbf16, #tpu.memory_space<vmem>>, %arg2: memref<1x8x8xf32, #tpu.memory_space<vmem>>, %arg3: memref<1x8x32xbf16, #tpu.memory_space<vmem>>) attributes {dimension_semantics = [#tpu.dimension_semantics<parallel>], iteration_bounds = array<i64: 2>, scalar_prefetch = 0 : i64, scratch_operands = 0 : i64, tpu.core_type = #tpu.core_type<tc>, window_params = [{transform_indices = @transform_0, window_bounds = array<i64: 1, 8, 96>}, {pipeline_mode = #tpu.pipeline_mode<synchronous>, transform_indices = @transform_1, window_bounds = array<i64: 1, 8, 8>}, {transform_indices = @transform_2, window_bounds = array<i64: 1, 8, 32>}]} {
    %c0 = arith.constant 0 : index
    %c0_0 = arith.constant 0 : index
    %c0_1 = arith.constant 0 : index
    %0 = vector.load %arg1[%c0, %c0_0, %c0_1] : memref<1x8x96xbf16, #tpu.memory_space<vmem>>, vector<1x8x96xbf16>
    %1 = vector.shape_cast %0 : vector<1x8x96xbf16> to vector<8x96xbf16>
    %2 = vector.extract_strided_slice %1 {offsets = [0, 0], sizes = [8, 32], strides = [1, 1]} : vector<8x96xbf16> to vector<8x32xbf16>
    %3 = vector.extract_strided_slice %1 {offsets = [0, 32], sizes = [8, 32], strides = [1, 1]} : vector<8x96xbf16> to vector<8x32xbf16>
    %4 = vector.extract_strided_slice %1 {offsets = [0, 64], sizes = [8, 32], strides = [1, 1]} : vector<8x96xbf16> to vector<8x32xbf16>
    %c0_2 = arith.constant 0 : index
    %c0_3 = arith.constant 0 : index
    %c0_4 = arith.constant 0 : index
    %5 = vector.load %arg2[%c0_2, %c0_3, %c0_4] : memref<1x8x8xf32, #tpu.memory_space<vmem>>, vector<1x8x8xf32>
    %6 = vector.shape_cast %5 : vector<1x8x8xf32> to vector<8x8xf32>
    %7 = vector.extract_strided_slice %2 {offsets = [0, 0], sizes = [8, 8], strides = [1, 1]} : vector<8x32xbf16> to vector<8x8xbf16>
    %8 = vector.extract_strided_slice %3 {offsets = [0, 0], sizes = [8, 8], strides = [1, 1]} : vector<8x32xbf16> to vector<8x8xbf16>
    %9 = vector.extract_strided_slice %4 {offsets = [0, 0], sizes = [8, 8], strides = [1, 1]} : vector<8x32xbf16> to vector<8x8xbf16>
    %cst = arith.constant dense<0.000000e+00> : vector<8x8xf32>
    %10 = tpu.matmul %7, %8, %cst {dimension_numbers = #tpu.dot_dimension_numbers<[1], [1], [0], [0], [0, 0, 1, 0], [], []>} : vector<8x8xbf16>, vector<8x8xbf16>, vector<8x8xf32> -> vector<8x8xf32>
    %cst_5 = arith.constant 0.353553385 : f32
    %11 = vector.broadcast %cst_5 : f32 to vector<8x8xf32>
    %12 = arith.mulf %10, %11 : vector<8x8xf32>
    %cst_6 = arith.constant 0.000000e+00 : f32
    %13 = vector.broadcast %cst_6 : f32 to vector<8x8xf32>
    %14 = arith.cmpf ogt, %6, %13 : vector<8x8xf32>
    %cst_7 = arith.constant -1.000000e+04 : f32
    %15 = vector.broadcast %cst_7 : f32 to vector<8x8xf32>
    %16 = arith.select %14, %12, %15 : vector<8x8xi1>, vector<8x8xf32>
    %cst_8 = arith.constant dense<0xFF800000> : vector<8xf32>
    %17 = vector.multi_reduction <maximumf>, %16, %cst_8 [1] : vector<8x8xf32> to vector<8xf32>
    %18 = vector.shape_cast %17 : vector<8xf32> to vector<8x1xf32>
    %19 = vector.broadcast %18 : vector<8x1xf32> to vector<8x8xf32>
    %20 = arith.subf %16, %19 : vector<8x8xf32>
    %21 = math.exp %20 : vector<8x8xf32>
    %cst_9 = arith.constant dense<0.000000e+00> : vector<8xf32>
    %22 = vector.multi_reduction <add>, %21, %cst_9 [1] : vector<8x8xf32> to vector<8xf32>
    %23 = vector.shape_cast %22 : vector<8xf32> to vector<8x1xf32>
    %24 = tpu.reciprocal %23 {approx = true} : vector<8x1xf32> -> vector<8x1xf32>
    %25 = vector.broadcast %24 : vector<8x1xf32> to vector<8x8xf32>
    %26 = arith.mulf %21, %25 : vector<8x8xf32>
    %27 = arith.truncf %26 : vector<8x8xf32> to vector<8x8xbf16>
    %cst_10 = arith.constant dense<0.000000e+00> : vector<8x8xf32>
    %28 = tpu.matmul %27, %9, %cst_10 {dimension_numbers = #tpu.dot_dimension_numbers<[1], [0], [0], [1], [0, 0, 1, 1], [], []>} : vector<8x8xbf16>, vector<8x8xbf16>, vector<8x8xf32> -> vector<8x8xf32>
    %29 = vector.extract_strided_slice %2 {offsets = [0, 8], sizes = [8, 8], strides = [1, 1]} : vector<8x32xbf16> to vector<8x8xbf16>
    %30 = vector.extract_strided_slice %3 {offsets = [0, 8], sizes = [8, 8], strides = [1, 1]} : vector<8x32xbf16> to vector<8x8xbf16>
    %31 = vector.extract_strided_slice %4 {offsets = [0, 8], sizes = [8, 8], strides = [1, 1]} : vector<8x32xbf16> to vector<8x8xbf16>
    %cst_11 = arith.constant dense<0.000000e+00> : vector<8x8xf32>
    %32 = tpu.matmul %29, %30, %cst_11 {dimension_numbers = #tpu.dot_dimension_numbers<[1], [1], [0], [0], [0, 0, 1, 0], [], []>} : vector<8x8xbf16>, vector<8x8xbf16>, vector<8x8xf32> -> vector<8x8xf32>
    %cst_12 = arith.constant 0.353553385 : f32
    %33 = vector.broadcast %cst_12 : f32 to vector<8x8xf32>
    %34 = arith.mulf %32, %33 : vector<8x8xf32>
    %cst_13 = arith.constant 0.000000e+00 : f32
    %35 = vector.broadcast %cst_13 : f32 to vector<8x8xf32>
    %36 = arith.cmpf ogt, %6, %35 : vector<8x8xf32>
    %cst_14 = arith.constant -1.000000e+04 : f32
    %37 = vector.broadcast %cst_14 : f32 to vector<8x8xf32>
    %38 = arith.select %36, %34, %37 : vector<8x8xi1>, vector<8x8xf32>
    %cst_15 = arith.constant dense<0xFF800000> : vector<8xf32>
    %39 = vector.multi_reduction <maximumf>, %38, %cst_15 [1] : vector<8x8xf32> to vector<8xf32>
    %40 = vector.shape_cast %39 : vector<8xf32> to vector<8x1xf32>
    %41 = vector.broadcast %40 : vector<8x1xf32> to vector<8x8xf32>
    %42 = arith.subf %38, %41 : vector<8x8xf32>
    %43 = math.exp %42 : vector<8x8xf32>
    %cst_16 = arith.constant dense<0.000000e+00> : vector<8xf32>
    %44 = vector.multi_reduction <add>, %43, %cst_16 [1] : vector<8x8xf32> to vector<8xf32>
    %45 = vector.shape_cast %44 : vector<8xf32> to vector<8x1xf32>
    %46 = tpu.reciprocal %45 {approx = true} : vector<8x1xf32> -> vector<8x1xf32>
    %47 = vector.broadcast %46 : vector<8x1xf32> to vector<8x8xf32>
    %48 = arith.mulf %43, %47 : vector<8x8xf32>
    %49 = arith.truncf %48 : vector<8x8xf32> to vector<8x8xbf16>
    %cst_17 = arith.constant dense<0.000000e+00> : vector<8x8xf32>
    %50 = tpu.matmul %49, %31, %cst_17 {dimension_numbers = #tpu.dot_dimension_numbers<[1], [0], [0], [1], [0, 0, 1, 1], [], []>} : vector<8x8xbf16>, vector<8x8xbf16>, vector<8x8xf32> -> vector<8x8xf32>
    %51 = vector.extract_strided_slice %2 {offsets = [0, 16], sizes = [8, 8], strides = [1, 1]} : vector<8x32xbf16> to vector<8x8xbf16>
    %52 = vector.extract_strided_slice %3 {offsets = [0, 16], sizes = [8, 8], strides = [1, 1]} : vector<8x32xbf16> to vector<8x8xbf16>
    %53 = vector.extract_strided_slice %4 {offsets = [0, 16], sizes = [8, 8], strides = [1, 1]} : vector<8x32xbf16> to vector<8x8xbf16>
    %cst_18 = arith.constant dense<0.000000e+00> : vector<8x8xf32>
    %54 = tpu.matmul %51, %52, %cst_18 {dimension_numbers = #tpu.dot_dimension_numbers<[1], [1], [0], [0], [0, 0, 1, 0], [], []>} : vector<8x8xbf16>, vector<8x8xbf16>, vector<8x8xf32> -> vector<8x8xf32>
    %cst_19 = arith.constant 0.353553385 : f32
    %55 = vector.broadcast %cst_19 : f32 to vector<8x8xf32>
    %56 = arith.mulf %54, %55 : vector<8x8xf32>
    %cst_20 = arith.constant 0.000000e+00 : f32
    %57 = vector.broadcast %cst_20 : f32 to vector<8x8xf32>
    %58 = arith.cmpf ogt, %6, %57 : vector<8x8xf32>
    %cst_21 = arith.constant -1.000000e+04 : f32
    %59 = vector.broadcast %cst_21 : f32 to vector<8x8xf32>
    %60 = arith.select %58, %56, %59 : vector<8x8xi1>, vector<8x8xf32>
    %cst_22 = arith.constant dense<0xFF800000> : vector<8xf32>
    %61 = vector.multi_reduction <maximumf>, %60, %cst_22 [1] : vector<8x8xf32> to vector<8xf32>
    %62 = vector.shape_cast %61 : vector<8xf32> to vector<8x1xf32>
    %63 = vector.broadcast %62 : vector<8x1xf32> to vector<8x8xf32>
    %64 = arith.subf %60, %63 : vector<8x8xf32>
    %65 = math.exp %64 : vector<8x8xf32>
    %cst_23 = arith.constant dense<0.000000e+00> : vector<8xf32>
    %66 = vector.multi_reduction <add>, %65, %cst_23 [1] : vector<8x8xf32> to vector<8xf32>
    %67 = vector.shape_cast %66 : vector<8xf32> to vector<8x1xf32>
    %68 = tpu.reciprocal %67 {approx = true} : vector<8x1xf32> -> vector<8x1xf32>
    %69 = vector.broadcast %68 : vector<8x1xf32> to vector<8x8xf32>
    %70 = arith.mulf %65, %69 : vector<8x8xf32>
    %71 = arith.truncf %70 : vector<8x8xf32> to vector<8x8xbf16>
    %cst_24 = arith.constant dense<0.000000e+00> : vector<8x8xf32>
    %72 = tpu.matmul %71, %53, %cst_24 {dimension_numbers = #tpu.dot_dimension_numbers<[1], [0], [0], [1], [0, 0, 1, 1], [], []>} : vector<8x8xbf16>, vector<8x8xbf16>, vector<8x8xf32> -> vector<8x8xf32>
    %73 = vector.extract_strided_slice %2 {offsets = [0, 24], sizes = [8, 8], strides = [1, 1]} : vector<8x32xbf16> to vector<8x8xbf16>
    %74 = vector.extract_strided_slice %3 {offsets = [0, 24], sizes = [8, 8], strides = [1, 1]} : vector<8x32xbf16> to vector<8x8xbf16>
    %75 = vector.extract_strided_slice %4 {offsets = [0, 24], sizes = [8, 8], strides = [1, 1]} : vector<8x32xbf16> to vector<8x8xbf16>
    %cst_25 = arith.constant dense<0.000000e+00> : vector<8x8xf32>
    %76 = tpu.matmul %73, %74, %cst_25 {dimension_numbers = #tpu.dot_dimension_numbers<[1], [1], [0], [0], [0, 0, 1, 0], [], []>} : vector<8x8xbf16>, vector<8x8xbf16>, vector<8x8xf32> -> vector<8x8xf32>
    %cst_26 = arith.constant 0.353553385 : f32
    %77 = vector.broadcast %cst_26 : f32 to vector<8x8xf32>
    %78 = arith.mulf %76, %77 : vector<8x8xf32>
    %cst_27 = arith.constant 0.000000e+00 : f32
    %79 = vector.broadcast %cst_27 : f32 to vector<8x8xf32>
    %80 = arith.cmpf ogt, %6, %79 : vector<8x8xf32>
    %cst_28 = arith.constant -1.000000e+04 : f32
    %81 = vector.broadcast %cst_28 : f32 to vector<8x8xf32>
    %82 = arith.select %80, %78, %81 : vector<8x8xi1>, vector<8x8xf32>
    %cst_29 = arith.constant dense<0xFF800000> : vector<8xf32>
    %83 = vector.multi_reduction <maximumf>, %82, %cst_29 [1] : vector<8x8xf32> to vector<8xf32>
    %84 = vector.shape_cast %83 : vector<8xf32> to vector<8x1xf32>
    %85 = vector.broadcast %84 : vector<8x1xf32> to vector<8x8xf32>
    %86 = arith.subf %82, %85 : vector<8x8xf32>
    %87 = math.exp %86 : vector<8x8xf32>
    %cst_30 = arith.constant dense<0.000000e+00> : vector<8xf32>
    %88 = vector.multi_reduction <add>, %87, %cst_30 [1] : vector<8x8xf32> to vector<8xf32>
    %89 = vector.shape_cast %88 : vector<8xf32> to vector<8x1xf32>
    %90 = tpu.reciprocal %89 {approx = true} : vector<8x1xf32> -> vector<8x1xf32>
    %91 = vector.broadcast %90 : vector<8x1xf32> to vector<8x8xf32>
    %92 = arith.mulf %87, %91 : vector<8x8xf32>
    %93 = arith.truncf %92 : vector<8x8xf32> to vector<8x8xbf16>
    %cst_31 = arith.constant dense<0.000000e+00> : vector<8x8xf32>
    %94 = tpu.matmul %93, %75, %cst_31 {dimension_numbers = #tpu.dot_dimension_numbers<[1], [0], [0], [1], [0, 0, 1, 1], [], []>} : vector<8x8xbf16>, vector<8x8xbf16>, vector<8x8xf32> -> vector<8x8xf32>
    %95 = tpu.concatenate %28, %50, %72, %94 in 1 : vector<8x8xf32>, vector<8x8xf32>, vector<8x8xf32>, vector<8x8xf32> -> vector<8x32xf32>
    %96 = arith.truncf %95 : vector<8x32xf32> to vector<8x32xbf16>
    %c0_32 = arith.constant 0 : index
    %c0_33 = arith.constant 0 : index
    %c0_34 = arith.constant 0 : index
    %97 = vector.load %arg3[%c0_32, %c0_33, %c0_34] : memref<1x8x32xbf16, #tpu.memory_space<vmem>>, vector<1x8x32xbf16>
    %98 = vector.shape_cast %97 : vector<1x8x32xbf16> to vector<8x32xbf16>
    %99 = vector.shape_cast %96 : vector<8x32xbf16> to vector<1x8x32xbf16>
    tpu.vector_store %arg3[%c0_32, %c0_33, %c0_34], %99 {strides = array<i32>} : memref<1x8x32xbf16, #tpu.memory_space<vmem>>, vector<1x8x32xbf16>,
    return
  }
  func.func @transform_0(%arg0: i32) -> (i32, i32, i32) {
    %c0_i32 = arith.constant 0 : i32
    %c0_i32_0 = arith.constant 0 : i32
    %c0_i32_1 = arith.constant 0 : i32
    return %arg0, %c0_i32, %c0_i32_0 : i32, i32, i32
  }
  func.func @transform_1(%arg0: i32) -> (i32, i32, i32) {
    %c0_i32 = arith.constant 0 : i32
    %c0_i32_0 = arith.constant 0 : i32
    %c0_i32_1 = arith.constant 0 : i32
    %c0_i32_2 = arith.constant 0 : i32
    return %c0_i32, %c0_i32_0, %c0_i32_1 : i32, i32, i32
  }
  func.func @transform_2(%arg0: i32) -> (i32, i32, i32) {
    %c0_i32 = arith.constant 0 : i32
    %c0_i32_0 = arith.constant 0 : i32
    %c0_i32_1 = arith.constant 0 : i32
    return %arg0, %c0_i32, %c0_i32_0 : i32, i32, i32
  }
}

module attributes {stable_mosaic.version = 11 : i64} {
  func.func @_matmul_bias_add_ln_kernel(%arg0: i32, %arg1: i32, %arg2: memref<16x32xbf16, #tpu.memory_space<vmem>>, %arg3: memref<32x32xbf16, #tpu.memory_space<vmem>>, %arg4: memref<1x32xf32, #tpu.memory_space<vmem>>, %arg5: memref<16x32xbf16, #tpu.memory_space<vmem>>, %arg6: memref<1x32xf32, #tpu.memory_space<vmem>>, %arg7: memref<1x32xf32, #tpu.memory_space<vmem>>, %arg8: memref<16x32xbf16, #tpu.memory_space<vmem>>, %arg9: memref<16x32xf32, #tpu.memory_space<vmem>>) attributes {dimension_semantics = [#tpu.dimension_semantics<parallel>, #tpu.dimension_semantics<arbitrary>], iteration_bounds = array<i64: 1, 1>, scalar_prefetch = 0 : i64, scratch_operands = 1 : i64, tpu.core_type = #tpu.core_type<tc>, window_params = [{transform_indices = @transform_0, window_bounds = array<i64: 16, 32>}, {transform_indices = @transform_1, window_bounds = array<i64: 32, 32>}, {pipeline_mode = #tpu.pipeline_mode<synchronous>, transform_indices = @transform_2, window_bounds = array<i64: 1, 32>}, {transform_indices = @transform_3, window_bounds = array<i64: 16, 32>}, {pipeline_mode = #tpu.pipeline_mode<synchronous>, transform_indices = @transform_4, window_bounds = array<i64: 1, 32>}, {pipeline_mode = #tpu.pipeline_mode<synchronous>, transform_indices = @transform_5, window_bounds = array<i64: 1, 32>}, {transform_indices = @transform_6, window_bounds = array<i64: 16, 32>}]} {
    %c0_i32 = arith.constant 0 : i32
    %0 = arith.cmpi eq, %arg1, %c0_i32 : i32
    %1 = arith.extui %0 : i1 to i32
    %c0_i32_0 = arith.constant 0 : i32
    %2 = arith.cmpi ne, %1, %c0_i32_0 : i32
    scf.if %2 {
      %cst_10 = arith.constant 0.000000e+00 : f32
      %12 = vector.broadcast %cst_10 : f32 to vector<16x32xf32>
      %c0_11 = arith.constant 0 : index
      %c0_12 = arith.constant 0 : index
      %13 = vector.load %arg9[%c0_11, %c0_12] : memref<16x32xf32, #tpu.memory_space<vmem>>, vector<16x32xf32>
      tpu.vector_store %arg9[%c0_11, %c0_12], %12 {strides = array<i32>} : memref<16x32xf32, #tpu.memory_space<vmem>>, vector<16x32xf32>,
    } else {
    }
    %c0 = arith.constant 0 : index
    %c0_1 = arith.constant 0 : index
    %3 = vector.load %arg9[%c0, %c0_1] : memref<16x32xf32, #tpu.memory_space<vmem>>, vector<16x32xf32>
    %c0_2 = arith.constant 0 : index
    %c0_3 = arith.constant 0 : index
    %4 = vector.load %arg2[%c0_2, %c0_3] : memref<16x32xbf16, #tpu.memory_space<vmem>>, vector<16x32xbf16>
    %c0_4 = arith.constant 0 : index
    %c0_5 = arith.constant 0 : index
    %5 = vector.load %arg3[%c0_4, %c0_5] : memref<32x32xbf16, #tpu.memory_space<vmem>>, vector<32x32xbf16>
    %cst = arith.constant dense<0.000000e+00> : vector<16x32xf32>
    %6 = tpu.matmul %4, %5, %cst {dimension_numbers = #tpu.dot_dimension_numbers<[1], [0], [0], [1], [0, 0, 1, 1], [], []>} : vector<16x32xbf16>, vector<32x32xbf16>, vector<16x32xf32> -> vector<16x32xf32>
    %7 = arith.addf %3, %6 : vector<16x32xf32>
    %c0_6 = arith.constant 0 : index
    %c0_7 = arith.constant 0 : index
    %8 = vector.load %arg9[%c0_6, %c0_7] : memref<16x32xf32, #tpu.memory_space<vmem>>, vector<16x32xf32>
    tpu.vector_store %arg9[%c0_6, %c0_7], %7 {strides = array<i32>} : memref<16x32xf32, #tpu.memory_space<vmem>>, vector<16x32xf32>,
    %c0_i32_8 = arith.constant 0 : i32
    %9 = arith.cmpi eq, %arg1, %c0_i32_8 : i32
    %10 = arith.extui %9 : i1 to i32
    %c0_i32_9 = arith.constant 0 : i32
    %11 = arith.cmpi ne, %10, %c0_i32_9 : i32
    scf.if %11 {
      %c0_10 = arith.constant 0 : index
      %c0_11 = arith.constant 0 : index
      %12 = vector.load %arg9[%c0_10, %c0_11] : memref<16x32xf32, #tpu.memory_space<vmem>>, vector<16x32xf32>
      %c0_12 = arith.constant 0 : index
      %c0_13 = arith.constant 0 : index
      %13 = vector.load %arg4[%c0_12, %c0_13] : memref<1x32xf32, #tpu.memory_space<vmem>>, vector<1x32xf32>
      %14 = vector.broadcast %13 : vector<1x32xf32> to vector<16x32xf32>
      %15 = arith.addf %12, %14 : vector<16x32xf32>
      %c0_14 = arith.constant 0 : index
      %c0_15 = arith.constant 0 : index
      %16 = vector.load %arg5[%c0_14, %c0_15] : memref<16x32xbf16, #tpu.memory_space<vmem>>, vector<16x32xbf16>
      %17 = arith.extf %16 : vector<16x32xbf16> to vector<16x32xf32>
      %18 = arith.addf %15, %17 : vector<16x32xf32>
      %cst_16 = arith.constant dense<0.000000e+00> : vector<16xf32>
      %19 = vector.multi_reduction <add>, %18, %cst_16 [1] : vector<16x32xf32> to vector<16xf32>
      %20 = vector.shape_cast %19 : vector<16xf32> to vector<16x1xf32>
      %cst_17 = arith.constant 3.200000e+01 : f32
      %21 = vector.broadcast %cst_17 : f32 to vector<16x1xf32>
      %22 = arith.divf %20, %21 : vector<16x1xf32>
      %23 = vector.broadcast %22 : vector<16x1xf32> to vector<16x32xf32>
      %24 = arith.subf %18, %23 : vector<16x32xf32>
      %25 = arith.mulf %24, %24 : vector<16x32xf32>
      %cst_18 = arith.constant dense<0.000000e+00> : vector<16xf32>
      %26 = vector.multi_reduction <add>, %25, %cst_18 [1] : vector<16x32xf32> to vector<16xf32>
      %27 = vector.shape_cast %26 : vector<16xf32> to vector<16x1xf32>
      %cst_19 = arith.constant 3.200000e+01 : f32
      %28 = vector.broadcast %cst_19 : f32 to vector<16x1xf32>
      %29 = arith.divf %27, %28 : vector<16x1xf32>
      %30 = vector.broadcast %22 : vector<16x1xf32> to vector<16x32xf32>
      %31 = arith.subf %18, %30 : vector<16x32xf32>
      %cst_20 = arith.constant 9.99999974E-6 : f32
      %32 = vector.broadcast %cst_20 : f32 to vector<16x1xf32>
      %33 = arith.addf %29, %32 : vector<16x1xf32>
      %34 = math.rsqrt %33 : vector<16x1xf32>
      %35 = vector.broadcast %34 : vector<16x1xf32> to vector<16x32xf32>
      %36 = arith.mulf %31, %35 : vector<16x32xf32>
      %c0_21 = arith.constant 0 : index
      %c0_22 = arith.constant 0 : index
      %37 = vector.load %arg6[%c0_21, %c0_22] : memref<1x32xf32, #tpu.memory_space<vmem>>, vector<1x32xf32>
      %38 = vector.broadcast %37 : vector<1x32xf32> to vector<16x32xf32>
      %39 = arith.mulf %36, %38 : vector<16x32xf32>
      %c0_23 = arith.constant 0 : index
      %c0_24 = arith.constant 0 : index
      %40 = vector.load %arg7[%c0_23, %c0_24] : memref<1x32xf32, #tpu.memory_space<vmem>>, vector<1x32xf32>
      %41 = vector.broadcast %40 : vector<1x32xf32> to vector<16x32xf32>
      %42 = arith.addf %39, %41 : vector<16x32xf32>
      %43 = arith.truncf %42 : vector<16x32xf32> to vector<16x32xbf16>
      %c0_25 = arith.constant 0 : index
      %c0_26 = arith.constant 0 : index
      %44 = vector.load %arg8[%c0_25, %c0_26] : memref<16x32xbf16, #tpu.memory_space<vmem>>, vector<16x32xbf16>
      tpu.vector_store %arg8[%c0_25, %c0_26], %43 {strides = array<i32>} : memref<16x32xbf16, #tpu.memory_space<vmem>>, vector<16x32xbf16>,
    } else {
    }
    return
  }
  func.func @transform_0(%arg0: i32, %arg1: i32) -> (i32, i32) {
    %c0_i32 = arith.constant 0 : i32
    return %arg0, %arg1 : i32, i32
  }
  func.func @transform_1(%arg0: i32, %arg1: i32) -> (i32, i32) {
    %c0_i32 = arith.constant 0 : i32
    %c0_i32_0 = arith.constant 0 : i32
    return %arg1, %c0_i32 : i32, i32
  }
  func.func @transform_2(%arg0: i32, %arg1: i32) -> (i32, i32) {
    %c0_i32 = arith.constant 0 : i32
    %c0_i32_0 = arith.constant 0 : i32
    %c0_i32_1 = arith.constant 0 : i32
    return %c0_i32, %c0_i32_0 : i32, i32
  }
  func.func @transform_3(%arg0: i32, %arg1: i32) -> (i32, i32) {
    %c0_i32 = arith.constant 0 : i32
    %c0_i32_0 = arith.constant 0 : i32
    return %arg0, %c0_i32 : i32, i32
  }
  func.func @transform_4(%arg0: i32, %arg1: i32) -> (i32, i32) {
    %c0_i32 = arith.constant 0 : i32
    %c0_i32_0 = arith.constant 0 : i32
    %c0_i32_1 = arith.constant 0 : i32
    return %c0_i32, %c0_i32_0 : i32, i32
  }
  func.func @transform_5(%arg0: i32, %arg1: i32) -> (i32, i32) {
    %c0_i32 = arith.constant 0 : i32
    %c0_i32_0 = arith.constant 0 : i32
    %c0_i32_1 = arith.constant 0 : i32
    return %c0_i32, %c0_i32_0 : i32, i32
  }
  func.func @transform_6(%arg0: i32, %arg1: i32) -> (i32, i32) {
    %c0_i32 = arith.constant 0 : i32
    %c0_i32_0 = arith.constant 0 : i32
    return %arg0, %c0_i32 : i32, i32
  }
}

module attributes {stable_mosaic.version = 11 : i64} {
  func.func @_matmul_bias_kernel(%arg0: i32, %arg1: i32, %arg2: i32, %arg3: memref<16x32xbf16, #tpu.memory_space<vmem>>, %arg4: memref<32x32xbf16, #tpu.memory_space<vmem>>, %arg5: memref<1x32xf32, #tpu.memory_space<vmem>>, %arg6: memref<16x32xbf16, #tpu.memory_space<vmem>>, %arg7: memref<16x32xf32, #tpu.memory_space<vmem>>) attributes {dimension_semantics = [#tpu.dimension_semantics<parallel>, #tpu.dimension_semantics<parallel>, #tpu.dimension_semantics<arbitrary>], iteration_bounds = array<i64: 1, 1, 1>, scalar_prefetch = 0 : i64, scratch_operands = 1 : i64, tpu.core_type = #tpu.core_type<tc>, window_params = [{transform_indices = @transform_0, window_bounds = array<i64: 16, 32>}, {transform_indices = @transform_1, window_bounds = array<i64: 32, 32>}, {transform_indices = @transform_2, window_bounds = array<i64: 1, 32>}, {transform_indices = @transform_3, window_bounds = array<i64: 16, 32>}]} {
    %c0_i32 = arith.constant 0 : i32
    %0 = arith.cmpi eq, %arg2, %c0_i32 : i32
    %1 = arith.extui %0 : i1 to i32
    %c0_i32_0 = arith.constant 0 : i32
    %2 = arith.cmpi ne, %1, %c0_i32_0 : i32
    scf.if %2 {
      %cst_10 = arith.constant 0.000000e+00 : f32
      %12 = vector.broadcast %cst_10 : f32 to vector<16x32xf32>
      %c0_11 = arith.constant 0 : index
      %c0_12 = arith.constant 0 : index
      %13 = vector.load %arg7[%c0_11, %c0_12] : memref<16x32xf32, #tpu.memory_space<vmem>>, vector<16x32xf32>
      tpu.vector_store %arg7[%c0_11, %c0_12], %12 {strides = array<i32>} : memref<16x32xf32, #tpu.memory_space<vmem>>, vector<16x32xf32>,
    } else {
    }
    %c0 = arith.constant 0 : index
    %c0_1 = arith.constant 0 : index
    %3 = vector.load %arg7[%c0, %c0_1] : memref<16x32xf32, #tpu.memory_space<vmem>>, vector<16x32xf32>
    %c0_2 = arith.constant 0 : index
    %c0_3 = arith.constant 0 : index
    %4 = vector.load %arg3[%c0_2, %c0_3] : memref<16x32xbf16, #tpu.memory_space<vmem>>, vector<16x32xbf16>
    %c0_4 = arith.constant 0 : index
    %c0_5 = arith.constant 0 : index
    %5 = vector.load %arg4[%c0_4, %c0_5] : memref<32x32xbf16, #tpu.memory_space<vmem>>, vector<32x32xbf16>
    %cst = arith.constant dense<0.000000e+00> : vector<16x32xf32>
    %6 = tpu.matmul %4, %5, %cst {dimension_numbers = #tpu.dot_dimension_numbers<[1], [0], [0], [1], [0, 0, 1, 1], [], []>} : vector<16x32xbf16>, vector<32x32xbf16>, vector<16x32xf32> -> vector<16x32xf32>
    %7 = arith.addf %3, %6 : vector<16x32xf32>
    %c0_6 = arith.constant 0 : index
    %c0_7 = arith.constant 0 : index
    %8 = vector.load %arg7[%c0_6, %c0_7] : memref<16x32xf32, #tpu.memory_space<vmem>>, vector<16x32xf32>
    tpu.vector_store %arg7[%c0_6, %c0_7], %7 {strides = array<i32>} : memref<16x32xf32, #tpu.memory_space<vmem>>, vector<16x32xf32>,
    %c0_i32_8 = arith.constant 0 : i32
    %9 = arith.cmpi eq, %arg2, %c0_i32_8 : i32
    %10 = arith.extui %9 : i1 to i32
    %c0_i32_9 = arith.constant 0 : i32
    %11 = arith.cmpi ne, %10, %c0_i32_9 : i32
    scf.if %11 {
      %c0_10 = arith.constant 0 : index
      %c0_11 = arith.constant 0 : index
      %12 = vector.load %arg7[%c0_10, %c0_11] : memref<16x32xf32, #tpu.memory_space<vmem>>, vector<16x32xf32>
      %c0_12 = arith.constant 0 : index
      %c0_13 = arith.constant 0 : index
      %13 = vector.load %arg5[%c0_12, %c0_13] : memref<1x32xf32, #tpu.memory_space<vmem>>, vector<1x32xf32>
      %14 = vector.broadcast %13 : vector<1x32xf32> to vector<16x32xf32>
      %15 = arith.addf %12, %14 : vector<16x32xf32>
      %16 = arith.truncf %15 : vector<16x32xf32> to vector<16x32xbf16>
      %c0_14 = arith.constant 0 : index
      %c0_15 = arith.constant 0 : index
      %17 = vector.load %arg6[%c0_14, %c0_15] : memref<16x32xbf16, #tpu.memory_space<vmem>>, vector<16x32xbf16>
      tpu.vector_store %arg6[%c0_14, %c0_15], %16 {strides = array<i32>} : memref<16x32xbf16, #tpu.memory_space<vmem>>, vector<16x32xbf16>,
    } else {
    }
    return
  }
  func.func @transform_0(%arg0: i32, %arg1: i32, %arg2: i32) -> (i32, i32) {
    %c0_i32 = arith.constant 0 : i32
    return %arg0, %arg2 : i32, i32
  }
  func.func @transform_1(%arg0: i32, %arg1: i32, %arg2: i32) -> (i32, i32) {
    %c0_i32 = arith.constant 0 : i32
    return %arg2, %arg1 : i32, i32
  }
  func.func @transform_2(%arg0: i32, %arg1: i32, %arg2: i32) -> (i32, i32) {
    %c0_i32 = arith.constant 0 : i32
    %c0_i32_0 = arith.constant 0 : i32
    return %c0_i32, %arg1 : i32, i32
  }
  func.func @transform_3(%arg0: i32, %arg1: i32, %arg2: i32) -> (i32, i32) {
    %c0_i32 = arith.constant 0 : i32
    return %arg0, %arg1 : i32, i32
  }
}

module attributes {stable_mosaic.version = 11 : i64} {
  func.func @_matmul_bias_kernel(%arg0: i32, %arg1: i32, %arg2: i32, %arg3: memref<24x32xbf16, #tpu.memory_space<vmem>>, %arg4: memref<32x64xbf16, #tpu.memory_space<vmem>>, %arg5: memref<1x64xf32, #tpu.memory_space<vmem>>, %arg6: memref<24x64xbf16, #tpu.memory_space<vmem>>, %arg7: memref<24x64xf32, #tpu.memory_space<vmem>>) attributes {dimension_semantics = [#tpu.dimension_semantics<parallel>, #tpu.dimension_semantics<parallel>, #tpu.dimension_semantics<arbitrary>], iteration_bounds = array<i64: 1, 1, 1>, scalar_prefetch = 0 : i64, scratch_operands = 1 : i64, tpu.core_type = #tpu.core_type<tc>, window_params = [{transform_indices = @transform_0, window_bounds = array<i64: 24, 32>}, {transform_indices = @transform_1, window_bounds = array<i64: 32, 64>}, {transform_indices = @transform_2, window_bounds = array<i64: 1, 64>}, {transform_indices = @transform_3, window_bounds = array<i64: 24, 64>}]} {
    %c0_i32 = arith.constant 0 : i32
    %0 = arith.cmpi eq, %arg2, %c0_i32 : i32
    %1 = arith.extui %0 : i1 to i32
    %c0_i32_0 = arith.constant 0 : i32
    %2 = arith.cmpi ne, %1, %c0_i32_0 : i32
    scf.if %2 {
      %cst_10 = arith.constant 0.000000e+00 : f32
      %12 = vector.broadcast %cst_10 : f32 to vector<24x64xf32>
      %c0_11 = arith.constant 0 : index
      %c0_12 = arith.constant 0 : index
      %13 = vector.load %arg7[%c0_11, %c0_12] : memref<24x64xf32, #tpu.memory_space<vmem>>, vector<24x64xf32>
      tpu.vector_store %arg7[%c0_11, %c0_12], %12 {strides = array<i32>} : memref<24x64xf32, #tpu.memory_space<vmem>>, vector<24x64xf32>,
    } else {
    }
    %c0 = arith.constant 0 : index
    %c0_1 = arith.constant 0 : index
    %3 = vector.load %arg7[%c0, %c0_1] : memref<24x64xf32, #tpu.memory_space<vmem>>, vector<24x64xf32>
    %c0_2 = arith.constant 0 : index
    %c0_3 = arith.constant 0 : index
    %4 = vector.load %arg3[%c0_2, %c0_3] : memref<24x32xbf16, #tpu.memory_space<vmem>>, vector<24x32xbf16>
    %c0_4 = arith.constant 0 : index
    %c0_5 = arith.constant 0 : index
    %5 = vector.load %arg4[%c0_4, %c0_5] : memref<32x64xbf16, #tpu.memory_space<vmem>>, vector<32x64xbf16>
    %cst = arith.constant dense<0.000000e+00> : vector<24x64xf32>
    %6 = tpu.matmul %4, %5, %cst {dimension_numbers = #tpu.dot_dimension_numbers<[1], [0], [0], [1], [0, 0, 1, 1], [], []>} : vector<24x32xbf16>, vector<32x64xbf16>, vector<24x64xf32> -> vector<24x64xf32>
    %7 = arith.addf %3, %6 : vector<24x64xf32>
    %c0_6 = arith.constant 0 : index
    %c0_7 = arith.constant 0 : index
    %8 = vector.load %arg7[%c0_6, %c0_7] : memref<24x64xf32, #tpu.memory_space<vmem>>, vector<24x64xf32>
    tpu.vector_store %arg7[%c0_6, %c0_7], %7 {strides = array<i32>} : memref<24x64xf32, #tpu.memory_space<vmem>>, vector<24x64xf32>,
    %c0_i32_8 = arith.constant 0 : i32
    %9 = arith.cmpi eq, %arg2, %c0_i32_8 : i32
    %10 = arith.extui %9 : i1 to i32
    %c0_i32_9 = arith.constant 0 : i32
    %11 = arith.cmpi ne, %10, %c0_i32_9 : i32
    scf.if %11 {
      %c0_10 = arith.constant 0 : index
      %c0_11 = arith.constant 0 : index
      %12 = vector.load %arg7[%c0_10, %c0_11] : memref<24x64xf32, #tpu.memory_space<vmem>>, vector<24x64xf32>
      %c0_12 = arith.constant 0 : index
      %c0_13 = arith.constant 0 : index
      %13 = vector.load %arg5[%c0_12, %c0_13] : memref<1x64xf32, #tpu.memory_space<vmem>>, vector<1x64xf32>
      %14 = vector.broadcast %13 : vector<1x64xf32> to vector<24x64xf32>
      %15 = arith.addf %12, %14 : vector<24x64xf32>
      %16 = arith.truncf %15 : vector<24x64xf32> to vector<24x64xbf16>
      %c0_14 = arith.constant 0 : index
      %c0_15 = arith.constant 0 : index
      %17 = vector.load %arg6[%c0_14, %c0_15] : memref<24x64xbf16, #tpu.memory_space<vmem>>, vector<24x64xbf16>
      tpu.vector_store %arg6[%c0_14, %c0_15], %16 {strides = array<i32>} : memref<24x64xbf16, #tpu.memory_space<vmem>>, vector<24x64xbf16>,
    } else {
    }
    return
  }
  func.func @transform_0(%arg0: i32, %arg1: i32, %arg2: i32) -> (i32, i32) {
    %c0_i32 = arith.constant 0 : i32
    return %arg0, %arg2 : i32, i32
  }
  func.func @transform_1(%arg0: i32, %arg1: i32, %arg2: i32) -> (i32, i32) {
    %c0_i32 = arith.constant 0 : i32
    return %arg2, %arg1 : i32, i32
  }
  func.func @transform_2(%arg0: i32, %arg1: i32, %arg2: i32) -> (i32, i32) {
    %c0_i32 = arith.constant 0 : i32
    %c0_i32_0 = arith.constant 0 : i32
    return %c0_i32, %arg1 : i32, i32
  }
  func.func @transform_3(%arg0: i32, %arg1: i32, %arg2: i32) -> (i32, i32) {
    %c0_i32 = arith.constant 0 : i32
    return %arg0, %arg1 : i32, i32
  }
}

module attributes {stable_mosaic.version = 11 : i64} {
  func.func @_attn_kernel(%arg0: i32, %arg1: memref<1x8x32xbf16, #tpu.memory_space<vmem>>, %arg2: memref<1x12x64xbf16, #tpu.memory_space<vmem>>, %arg3: memref<1x8x32xbf16, #tpu.memory_space<vmem>>) attributes {dimension_semantics = [#tpu.dimension_semantics<parallel>], iteration_bounds = array<i64: 2>, scalar_prefetch = 0 : i64, scratch_operands = 0 : i64, tpu.core_type = #tpu.core_type<tc>, window_params = [{transform_indices = @transform_0, window_bounds = array<i64: 1, 8, 32>}, {transform_indices = @transform_1, window_bounds = array<i64: 1, 12, 64>}, {transform_indices = @transform_2, window_bounds = array<i64: 1, 8, 32>}]} {
    %c0 = arith.constant 0 : index
    %c0_0 = arith.constant 0 : index
    %c0_1 = arith.constant 0 : index
    %0 = vector.load %arg1[%c0, %c0_0, %c0_1] : memref<1x8x32xbf16, #tpu.memory_space<vmem>>, vector<1x8x32xbf16>
    %1 = vector.shape_cast %0 : vector<1x8x32xbf16> to vector<8x32xbf16>
    %c0_2 = arith.constant 0 : index
    %c0_3 = arith.constant 0 : index
    %c0_4 = arith.constant 0 : index
    %2 = vector.load %arg2[%c0_2, %c0_3, %c0_4] : memref<1x12x64xbf16, #tpu.memory_space<vmem>>, vector<1x12x64xbf16>
    %3 = vector.shape_cast %2 : vector<1x12x64xbf16> to vector<12x64xbf16>
    %4 = vector.extract_strided_slice %3 {offsets = [0, 0], sizes = [12, 32], strides = [1, 1]} : vector<12x64xbf16> to vector<12x32xbf16>
    %5 = vector.extract_strided_slice %3 {offsets = [0, 32], sizes = [12, 32], strides = [1, 1]} : vector<12x64xbf16> to vector<12x32xbf16>
    %6 = vector.extract_strided_slice %1 {offsets = [0, 0], sizes = [8, 8], strides = [1, 1]} : vector<8x32xbf16> to vector<8x8xbf16>
    %7 = vector.extract_strided_slice %4 {offsets = [0, 0], sizes = [12, 8], strides = [1, 1]} : vector<12x32xbf16> to vector<12x8xbf16>
    %8 = vector.extract_strided_slice %5 {offsets = [0, 0], sizes = [12, 8], strides = [1, 1]} : vector<12x32xbf16> to vector<12x8xbf16>
    %cst = arith.constant dense<0.000000e+00> : vector<8x12xf32>
    %9 = tpu.matmul %6, %7, %cst {dimension_numbers = #tpu.dot_dimension_numbers<[1], [1], [0], [0], [0, 0, 1, 0], [], []>} : vector<8x8xbf16>, vector<12x8xbf16>, vector<8x12xf32> -> vector<8x12xf32>
    %cst_5 = arith.constant 0.353553385 : f32
    %10 = vector.broadcast %cst_5 : f32 to vector<8x12xf32>
    %11 = arith.mulf %9, %10 : vector<8x12xf32>
    %cst_6 = arith.constant dense<0xFF800000> : vector<8xf32>
    %12 = vector.multi_reduction <maximumf>, %11, %cst_6 [1] : vector<8x12xf32> to vector<8xf32>
    %13 = vector.shape_cast %12 : vector<8xf32> to vector<8x1xf32>
    %14 = vector.broadcast %13 : vector<8x1xf32> to vector<8x12xf32>
    %15 = arith.subf %11, %14 : vector<8x12xf32>
    %16 = math.exp %15 : vector<8x12xf32>
    %cst_7 = arith.constant dense<0.000000e+00> : vector<8xf32>
    %17 = vector.multi_reduction <add>, %16, %cst_7 [1] : vector<8x12xf32> to vector<8xf32>
    %18 = vector.shape_cast %17 : vector<8xf32> to vector<8x1xf32>
    %19 = tpu.reciprocal %18 {approx = true} : vector<8x1xf32> -> vector<8x1xf32>
    %20 = vector.broadcast %19 : vector<8x1xf32> to vector<8x12xf32>
    %21 = arith.mulf %16, %20 : vector<8x12xf32>
    %22 = arith.truncf %21 : vector<8x12xf32> to vector<8x12xbf16>
    %cst_8 = arith.constant dense<0.000000e+00> : vector<8x8xf32>
    %23 = tpu.matmul %22, %8, %cst_8 {dimension_numbers = #tpu.dot_dimension_numbers<[1], [0], [0], [1], [0, 0, 1, 1], [], []>} : vector<8x12xbf16>, vector<12x8xbf16>, vector<8x8xf32> -> vector<8x8xf32>
    %24 = vector.extract_strided_slice %1 {offsets = [0, 8], sizes = [8, 8], strides = [1, 1]} : vector<8x32xbf16> to vector<8x8xbf16>
    %25 = vector.extract_strided_slice %4 {offsets = [0, 8], sizes = [12, 8], strides = [1, 1]} : vector<12x32xbf16> to vector<12x8xbf16>
    %26 = vector.extract_strided_slice %5 {offsets = [0, 8], sizes = [12, 8], strides = [1, 1]} : vector<12x32xbf16> to vector<12x8xbf16>
    %cst_9 = arith.constant dense<0.000000e+00> : vector<8x12xf32>
    %27 = tpu.matmul %24, %25, %cst_9 {dimension_numbers = #tpu.dot_dimension_numbers<[1], [1], [0], [0], [0, 0, 1, 0], [], []>} : vector<8x8xbf16>, vector<12x8xbf16>, vector<8x12xf32> -> vector<8x12xf32>
    %cst_10 = arith.constant 0.353553385 : f32
    %28 = vector.broadcast %cst_10 : f32 to vector<8x12xf32>
    %29 = arith.mulf %27, %28 : vector<8x12xf32>
    %cst_11 = arith.constant dense<0xFF800000> : vector<8xf32>
    %30 = vector.multi_reduction <maximumf>, %29, %cst_11 [1] : vector<8x12xf32> to vector<8xf32>
    %31 = vector.shape_cast %30 : vector<8xf32> to vector<8x1xf32>
    %32 = vector.broadcast %31 : vector<8x1xf32> to vector<8x12xf32>
    %33 = arith.subf %29, %32 : vector<8x12xf32>
    %34 = math.exp %33 : vector<8x12xf32>
    %cst_12 = arith.constant dense<0.000000e+00> : vector<8xf32>
    %35 = vector.multi_reduction <add>, %34, %cst_12 [1] : vector<8x12xf32> to vector<8xf32>
    %36 = vector.shape_cast %35 : vector<8xf32> to vector<8x1xf32>
    %37 = tpu.reciprocal %36 {approx = true} : vector<8x1xf32> -> vector<8x1xf32>
    %38 = vector.broadcast %37 : vector<8x1xf32> to vector<8x12xf32>
    %39 = arith.mulf %34, %38 : vector<8x12xf32>
    %40 = arith.truncf %39 : vector<8x12xf32> to vector<8x12xbf16>
    %cst_13 = arith.constant dense<0.000000e+00> : vector<8x8xf32>
    %41 = tpu.matmul %40, %26, %cst_13 {dimension_numbers = #tpu.dot_dimension_numbers<[1], [0], [0], [1], [0, 0, 1, 1], [], []>} : vector<8x12xbf16>, vector<12x8xbf16>, vector<8x8xf32> -> vector<8x8xf32>
    %42 = vector.extract_strided_slice %1 {offsets = [0, 16], sizes = [8, 8], strides = [1, 1]} : vector<8x32xbf16> to vector<8x8xbf16>
    %43 = vector.extract_strided_slice %4 {offsets = [0, 16], sizes = [12, 8], strides = [1, 1]} : vector<12x32xbf16> to vector<12x8xbf16>
    %44 = vector.extract_strided_slice %5 {offsets = [0, 16], sizes = [12, 8], strides = [1, 1]} : vector<12x32xbf16> to vector<12x8xbf16>
    %cst_14 = arith.constant dense<0.000000e+00> : vector<8x12xf32>
    %45 = tpu.matmul %42, %43, %cst_14 {dimension_numbers = #tpu.dot_dimension_numbers<[1], [1], [0], [0], [0, 0, 1, 0], [], []>} : vector<8x8xbf16>, vector<12x8xbf16>, vector<8x12xf32> -> vector<8x12xf32>
    %cst_15 = arith.constant 0.353553385 : f32
    %46 = vector.broadcast %cst_15 : f32 to vector<8x12xf32>
    %47 = arith.mulf %45, %46 : vector<8x12xf32>
    %cst_16 = arith.constant dense<0xFF800000> : vector<8xf32>
    %48 = vector.multi_reduction <maximumf>, %47, %cst_16 [1] : vector<8x12xf32> to vector<8xf32>
    %49 = vector.shape_cast %48 : vector<8xf32> to vector<8x1xf32>
    %50 = vector.broadcast %49 : vector<8x1xf32> to vector<8x12xf32>
    %51 = arith.subf %47, %50 : vector<8x12xf32>
    %52 = math.exp %51 : vector<8x12xf32>
    %cst_17 = arith.constant dense<0.000000e+00> : vector<8xf32>
    %53 = vector.multi_reduction <add>, %52, %cst_17 [1] : vector<8x12xf32> to vector<8xf32>
    %54 = vector.shape_cast %53 : vector<8xf32> to vector<8x1xf32>
    %55 = tpu.reciprocal %54 {approx = true} : vector<8x1xf32> -> vector<8x1xf32>
    %56 = vector.broadcast %55 : vector<8x1xf32> to vector<8x12xf32>
    %57 = arith.mulf %52, %56 : vector<8x12xf32>
    %58 = arith.truncf %57 : vector<8x12xf32> to vector<8x12xbf16>
    %cst_18 = arith.constant dense<0.000000e+00> : vector<8x8xf32>
    %59 = tpu.matmul %58, %44, %cst_18 {dimension_numbers = #tpu.dot_dimension_numbers<[1], [0], [0], [1], [0, 0, 1, 1], [], []>} : vector<8x12xbf16>, vector<12x8xbf16>, vector<8x8xf32> -> vector<8x8xf32>
    %60 = vector.extract_strided_slice %1 {offsets = [0, 24], sizes = [8, 8], strides = [1, 1]} : vector<8x32xbf16> to vector<8x8xbf16>
    %61 = vector.extract_strided_slice %4 {offsets = [0, 24], sizes = [12, 8], strides = [1, 1]} : vector<12x32xbf16> to vector<12x8xbf16>
    %62 = vector.extract_strided_slice %5 {offsets = [0, 24], sizes = [12, 8], strides = [1, 1]} : vector<12x32xbf16> to vector<12x8xbf16>
    %cst_19 = arith.constant dense<0.000000e+00> : vector<8x12xf32>
    %63 = tpu.matmul %60, %61, %cst_19 {dimension_numbers = #tpu.dot_dimension_numbers<[1], [1], [0], [0], [0, 0, 1, 0], [], []>} : vector<8x8xbf16>, vector<12x8xbf16>, vector<8x12xf32> -> vector<8x12xf32>
    %cst_20 = arith.constant 0.353553385 : f32
    %64 = vector.broadcast %cst_20 : f32 to vector<8x12xf32>
    %65 = arith.mulf %63, %64 : vector<8x12xf32>
    %cst_21 = arith.constant dense<0xFF800000> : vector<8xf32>
    %66 = vector.multi_reduction <maximumf>, %65, %cst_21 [1] : vector<8x12xf32> to vector<8xf32>
    %67 = vector.shape_cast %66 : vector<8xf32> to vector<8x1xf32>
    %68 = vector.broadcast %67 : vector<8x1xf32> to vector<8x12xf32>
    %69 = arith.subf %65, %68 : vector<8x12xf32>
    %70 = math.exp %69 : vector<8x12xf32>
    %cst_22 = arith.constant dense<0.000000e+00> : vector<8xf32>
    %71 = vector.multi_reduction <add>, %70, %cst_22 [1] : vector<8x12xf32> to vector<8xf32>
    %72 = vector.shape_cast %71 : vector<8xf32> to vector<8x1xf32>
    %73 = tpu.reciprocal %72 {approx = true} : vector<8x1xf32> -> vector<8x1xf32>
    %74 = vector.broadcast %73 : vector<8x1xf32> to vector<8x12xf32>
    %75 = arith.mulf %70, %74 : vector<8x12xf32>
    %76 = arith.truncf %75 : vector<8x12xf32> to vector<8x12xbf16>
    %cst_23 = arith.constant dense<0.000000e+00> : vector<8x8xf32>
    %77 = tpu.matmul %76, %62, %cst_23 {dimension_numbers = #tpu.dot_dimension_numbers<[1], [0], [0], [1], [0, 0, 1, 1], [], []>} : vector<8x12xbf16>, vector<12x8xbf16>, vector<8x8xf32> -> vector<8x8xf32>
    %78 = tpu.concatenate %23, %41, %59, %77 in 1 : vector<8x8xf32>, vector<8x8xf32>, vector<8x8xf32>, vector<8x8xf32> -> vector<8x32xf32>
    %79 = arith.truncf %78 : vector<8x32xf32> to vector<8x32xbf16>
    %c0_24 = arith.constant 0 : index
    %c0_25 = arith.constant 0 : index
    %c0_26 = arith.constant 0 : index
    %80 = vector.load %arg3[%c0_24, %c0_25, %c0_26] : memref<1x8x32xbf16, #tpu.memory_space<vmem>>, vector<1x8x32xbf16>
    %81 = vector.shape_cast %80 : vector<1x8x32xbf16> to vector<8x32xbf16>
    %82 = vector.shape_cast %79 : vector<8x32xbf16> to vector<1x8x32xbf16>
    tpu.vector_store %arg3[%c0_24, %c0_25, %c0_26], %82 {strides = array<i32>} : memref<1x8x32xbf16, #tpu.memory_space<vmem>>, vector<1x8x32xbf16>,
    return
  }
  func.func @transform_0(%arg0: i32) -> (i32, i32, i32) {
    %c0_i32 = arith.constant 0 : i32
    %c0_i32_0 = arith.constant 0 : i32
    %c0_i32_1 = arith.constant 0 : i32
    return %arg0, %c0_i32, %c0_i32_0 : i32, i32, i32
  }
  func.func @transform_1(%arg0: i32) -> (i32, i32, i32) {
    %c0_i32 = arith.constant 0 : i32
    %c0_i32_0 = arith.constant 0 : i32
    %c0_i32_1 = arith.constant 0 : i32
    return %arg0, %c0_i32, %c0_i32_0 : i32, i32, i32
  }
  func.func @transform_2(%arg0: i32) -> (i32, i32, i32) {
    %c0_i32 = arith.constant 0 : i32
    %c0_i32_0 = arith.constant 0 : i32
    %c0_i32_1 = arith.constant 0 : i32
    return %arg0, %c0_i32, %c0_i32_0 : i32, i32, i32
  }
}

module attributes {stable_mosaic.version = 11 : i64} {
  func.func @_matmul_bias_kernel(%arg0: i32, %arg1: i32, %arg2: i32, %arg3: memref<16x32xbf16, #tpu.memory_space<vmem>>, %arg4: memref<32x64xbf16, #tpu.memory_space<vmem>>, %arg5: memref<1x64xf32, #tpu.memory_space<vmem>>, %arg6: memref<16x64xbf16, #tpu.memory_space<vmem>>, %arg7: memref<16x64xf32, #tpu.memory_space<vmem>>) attributes {dimension_semantics = [#tpu.dimension_semantics<parallel>, #tpu.dimension_semantics<parallel>, #tpu.dimension_semantics<arbitrary>], iteration_bounds = array<i64: 1, 1, 1>, scalar_prefetch = 0 : i64, scratch_operands = 1 : i64, tpu.core_type = #tpu.core_type<tc>, window_params = [{transform_indices = @transform_0, window_bounds = array<i64: 16, 32>}, {transform_indices = @transform_1, window_bounds = array<i64: 32, 64>}, {transform_indices = @transform_2, window_bounds = array<i64: 1, 64>}, {transform_indices = @transform_3, window_bounds = array<i64: 16, 64>}]} {
    %c0_i32 = arith.constant 0 : i32
    %0 = arith.cmpi eq, %arg2, %c0_i32 : i32
    %1 = arith.extui %0 : i1 to i32
    %c0_i32_0 = arith.constant 0 : i32
    %2 = arith.cmpi ne, %1, %c0_i32_0 : i32
    scf.if %2 {
      %cst_10 = arith.constant 0.000000e+00 : f32
      %12 = vector.broadcast %cst_10 : f32 to vector<16x64xf32>
      %c0_11 = arith.constant 0 : index
      %c0_12 = arith.constant 0 : index
      %13 = vector.load %arg7[%c0_11, %c0_12] : memref<16x64xf32, #tpu.memory_space<vmem>>, vector<16x64xf32>
      tpu.vector_store %arg7[%c0_11, %c0_12], %12 {strides = array<i32>} : memref<16x64xf32, #tpu.memory_space<vmem>>, vector<16x64xf32>,
    } else {
    }
    %c0 = arith.constant 0 : index
    %c0_1 = arith.constant 0 : index
    %3 = vector.load %arg7[%c0, %c0_1] : memref<16x64xf32, #tpu.memory_space<vmem>>, vector<16x64xf32>
    %c0_2 = arith.constant 0 : index
    %c0_3 = arith.constant 0 : index
    %4 = vector.load %arg3[%c0_2, %c0_3] : memref<16x32xbf16, #tpu.memory_space<vmem>>, vector<16x32xbf16>
    %c0_4 = arith.constant 0 : index
    %c0_5 = arith.constant 0 : index
    %5 = vector.load %arg4[%c0_4, %c0_5] : memref<32x64xbf16, #tpu.memory_space<vmem>>, vector<32x64xbf16>
    %cst = arith.constant dense<0.000000e+00> : vector<16x64xf32>
    %6 = tpu.matmul %4, %5, %cst {dimension_numbers = #tpu.dot_dimension_numbers<[1], [0], [0], [1], [0, 0, 1, 1], [], []>} : vector<16x32xbf16>, vector<32x64xbf16>, vector<16x64xf32> -> vector<16x64xf32>
    %7 = arith.addf %3, %6 : vector<16x64xf32>
    %c0_6 = arith.constant 0 : index
    %c0_7 = arith.constant 0 : index
    %8 = vector.load %arg7[%c0_6, %c0_7] : memref<16x64xf32, #tpu.memory_space<vmem>>, vector<16x64xf32>
    tpu.vector_store %arg7[%c0_6, %c0_7], %7 {strides = array<i32>} : memref<16x64xf32, #tpu.memory_space<vmem>>, vector<16x64xf32>,
    %c0_i32_8 = arith.constant 0 : i32
    %9 = arith.cmpi eq, %arg2, %c0_i32_8 : i32
    %10 = arith.extui %9 : i1 to i32
    %c0_i32_9 = arith.constant 0 : i32
    %11 = arith.cmpi ne, %10, %c0_i32_9 : i32
    scf.if %11 {
      %c0_10 = arith.constant 0 : index
      %c0_11 = arith.constant 0 : index
      %12 = vector.load %arg7[%c0_10, %c0_11] : memref<16x64xf32, #tpu.memory_space<vmem>>, vector<16x64xf32>
      %c0_12 = arith.constant 0 : index
      %c0_13 = arith.constant 0 : index
      %13 = vector.load %arg5[%c0_12, %c0_13] : memref<1x64xf32, #tpu.memory_space<vmem>>, vector<1x64xf32>
      %14 = vector.broadcast %13 : vector<1x64xf32> to vector<16x64xf32>
      %15 = arith.addf %12, %14 : vector<16x64xf32>
      %cst_14 = arith.constant 0.000000e+00 : f32
      %16 = vector.broadcast %cst_14 : f32 to vector<16x64xf32>
      %17 = arith.maximumf %15, %16 : vector<16x64xf32>
      %18 = arith.truncf %17 : vector<16x64xf32> to vector<16x64xbf16>
      %c0_15 = arith.constant 0 : index
      %c0_16 = arith.constant 0 : index
      %19 = vector.load %arg6[%c0_15, %c0_16] : memref<16x64xbf16, #tpu.memory_space<vmem>>, vector<16x64xbf16>
      tpu.vector_store %arg6[%c0_15, %c0_16], %18 {strides = array<i32>} : memref<16x64xbf16, #tpu.memory_space<vmem>>, vector<16x64xbf16>,
    } else {
    }
    return
  }
  func.func @transform_0(%arg0: i32, %arg1: i32, %arg2: i32) -> (i32, i32) {
    %c0_i32 = arith.constant 0 : i32
    return %arg0, %arg2 : i32, i32
  }
  func.func @transform_1(%arg0: i32, %arg1: i32, %arg2: i32) -> (i32, i32) {
    %c0_i32 = arith.constant 0 : i32
    return %arg2, %arg1 : i32, i32
  }
  func.func @transform_2(%arg0: i32, %arg1: i32, %arg2: i32) -> (i32, i32) {
    %c0_i32 = arith.constant 0 : i32
    %c0_i32_0 = arith.constant 0 : i32
    return %c0_i32, %arg1 : i32, i32
  }
  func.func @transform_3(%arg0: i32, %arg1: i32, %arg2: i32) -> (i32, i32) {
    %c0_i32 = arith.constant 0 : i32
    return %arg0, %arg1 : i32, i32
  }
}

module attributes {stable_mosaic.version = 11 : i64} {
  func.func @_matmul_bias_add_ln_kernel(%arg0: i32, %arg1: i32, %arg2: memref<16x64xbf16, #tpu.memory_space<vmem>>, %arg3: memref<64x32xbf16, #tpu.memory_space<vmem>>, %arg4: memref<1x32xf32, #tpu.memory_space<vmem>>, %arg5: memref<16x32xbf16, #tpu.memory_space<vmem>>, %arg6: memref<1x32xf32, #tpu.memory_space<vmem>>, %arg7: memref<1x32xf32, #tpu.memory_space<vmem>>, %arg8: memref<16x32xbf16, #tpu.memory_space<vmem>>, %arg9: memref<16x32xf32, #tpu.memory_space<vmem>>) attributes {dimension_semantics = [#tpu.dimension_semantics<parallel>, #tpu.dimension_semantics<arbitrary>], iteration_bounds = array<i64: 1, 1>, scalar_prefetch = 0 : i64, scratch_operands = 1 : i64, tpu.core_type = #tpu.core_type<tc>, window_params = [{transform_indices = @transform_0, window_bounds = array<i64: 16, 64>}, {transform_indices = @transform_1, window_bounds = array<i64: 64, 32>}, {pipeline_mode = #tpu.pipeline_mode<synchronous>, transform_indices = @transform_2, window_bounds = array<i64: 1, 32>}, {transform_indices = @transform_3, window_bounds = array<i64: 16, 32>}, {pipeline_mode = #tpu.pipeline_mode<synchronous>, transform_indices = @transform_4, window_bounds = array<i64: 1, 32>}, {pipeline_mode = #tpu.pipeline_mode<synchronous>, transform_indices = @transform_5, window_bounds = array<i64: 1, 32>}, {transform_indices = @transform_6, window_bounds = array<i64: 16, 32>}]} {
    %c0_i32 = arith.constant 0 : i32
    %0 = arith.cmpi eq, %arg1, %c0_i32 : i32
    %1 = arith.extui %0 : i1 to i32
    %c0_i32_0 = arith.constant 0 : i32
    %2 = arith.cmpi ne, %1, %c0_i32_0 : i32
    scf.if %2 {
      %cst_10 = arith.constant 0.000000e+00 : f32
      %12 = vector.broadcast %cst_10 : f32 to vector<16x32xf32>
      %c0_11 = arith.constant 0 : index
      %c0_12 = arith.constant 0 : index
      %13 = vector.load %arg9[%c0_11, %c0_12] : memref<16x32xf32, #tpu.memory_space<vmem>>, vector<16x32xf32>
      tpu.vector_store %arg9[%c0_11, %c0_12], %12 {strides = array<i32>} : memref<16x32xf32, #tpu.memory_space<vmem>>, vector<16x32xf32>,
    } else {
    }
    %c0 = arith.constant 0 : index
    %c0_1 = arith.constant 0 : index
    %3 = vector.load %arg9[%c0, %c0_1] : memref<16x32xf32, #tpu.memory_space<vmem>>, vector<16x32xf32>
    %c0_2 = arith.constant 0 : index
    %c0_3 = arith.constant 0 : index
    %4 = vector.load %arg2[%c0_2, %c0_3] : memref<16x64xbf16, #tpu.memory_space<vmem>>, vector<16x64xbf16>
    %c0_4 = arith.constant 0 : index
    %c0_5 = arith.constant 0 : index
    %5 = vector.load %arg3[%c0_4, %c0_5] : memref<64x32xbf16, #tpu.memory_space<vmem>>, vector<64x32xbf16>
    %cst = arith.constant dense<0.000000e+00> : vector<16x32xf32>
    %6 = tpu.matmul %4, %5, %cst {dimension_numbers = #tpu.dot_dimension_numbers<[1], [0], [0], [1], [0, 0, 1, 1], [], []>} : vector<16x64xbf16>, vector<64x32xbf16>, vector<16x32xf32> -> vector<16x32xf32>
    %7 = arith.addf %3, %6 : vector<16x32xf32>
    %c0_6 = arith.constant 0 : index
    %c0_7 = arith.constant 0 : index
    %8 = vector.load %arg9[%c0_6, %c0_7] : memref<16x32xf32, #tpu.memory_space<vmem>>, vector<16x32xf32>
    tpu.vector_store %arg9[%c0_6, %c0_7], %7 {strides = array<i32>} : memref<16x32xf32, #tpu.memory_space<vmem>>, vector<16x32xf32>,
    %c0_i32_8 = arith.constant 0 : i32
    %9 = arith.cmpi eq, %arg1, %c0_i32_8 : i32
    %10 = arith.extui %9 : i1 to i32
    %c0_i32_9 = arith.constant 0 : i32
    %11 = arith.cmpi ne, %10, %c0_i32_9 : i32
    scf.if %11 {
      %c0_10 = arith.constant 0 : index
      %c0_11 = arith.constant 0 : index
      %12 = vector.load %arg9[%c0_10, %c0_11] : memref<16x32xf32, #tpu.memory_space<vmem>>, vector<16x32xf32>
      %c0_12 = arith.constant 0 : index
      %c0_13 = arith.constant 0 : index
      %13 = vector.load %arg4[%c0_12, %c0_13] : memref<1x32xf32, #tpu.memory_space<vmem>>, vector<1x32xf32>
      %14 = vector.broadcast %13 : vector<1x32xf32> to vector<16x32xf32>
      %15 = arith.addf %12, %14 : vector<16x32xf32>
      %c0_14 = arith.constant 0 : index
      %c0_15 = arith.constant 0 : index
      %16 = vector.load %arg5[%c0_14, %c0_15] : memref<16x32xbf16, #tpu.memory_space<vmem>>, vector<16x32xbf16>
      %17 = arith.extf %16 : vector<16x32xbf16> to vector<16x32xf32>
      %18 = arith.addf %15, %17 : vector<16x32xf32>
      %cst_16 = arith.constant dense<0.000000e+00> : vector<16xf32>
      %19 = vector.multi_reduction <add>, %18, %cst_16 [1] : vector<16x32xf32> to vector<16xf32>
      %20 = vector.shape_cast %19 : vector<16xf32> to vector<16x1xf32>
      %cst_17 = arith.constant 3.200000e+01 : f32
      %21 = vector.broadcast %cst_17 : f32 to vector<16x1xf32>
      %22 = arith.divf %20, %21 : vector<16x1xf32>
      %23 = vector.broadcast %22 : vector<16x1xf32> to vector<16x32xf32>
      %24 = arith.subf %18, %23 : vector<16x32xf32>
      %25 = arith.mulf %24, %24 : vector<16x32xf32>
      %cst_18 = arith.constant dense<0.000000e+00> : vector<16xf32>
      %26 = vector.multi_reduction <add>, %25, %cst_18 [1] : vector<16x32xf32> to vector<16xf32>
      %27 = vector.shape_cast %26 : vector<16xf32> to vector<16x1xf32>
      %cst_19 = arith.constant 3.200000e+01 : f32
      %28 = vector.broadcast %cst_19 : f32 to vector<16x1xf32>
      %29 = arith.divf %27, %28 : vector<16x1xf32>
      %30 = vector.broadcast %22 : vector<16x1xf32> to vector<16x32xf32>
      %31 = arith.subf %18, %30 : vector<16x32xf32>
      %cst_20 = arith.constant 9.99999974E-6 : f32
      %32 = vector.broadcast %cst_20 : f32 to vector<16x1xf32>
      %33 = arith.addf %29, %32 : vector<16x1xf32>
      %34 = math.rsqrt %33 : vector<16x1xf32>
      %35 = vector.broadcast %34 : vector<16x1xf32> to vector<16x32xf32>
      %36 = arith.mulf %31, %35 : vector<16x32xf32>
      %c0_21 = arith.constant 0 : index
      %c0_22 = arith.constant 0 : index
      %37 = vector.load %arg6[%c0_21, %c0_22] : memref<1x32xf32, #tpu.memory_space<vmem>>, vector<1x32xf32>
      %38 = vector.broadcast %37 : vector<1x32xf32> to vector<16x32xf32>
      %39 = arith.mulf %36, %38 : vector<16x32xf32>
      %c0_23 = arith.constant 0 : index
      %c0_24 = arith.constant 0 : index
      %40 = vector.load %arg7[%c0_23, %c0_24] : memref<1x32xf32, #tpu.memory_space<vmem>>, vector<1x32xf32>
      %41 = vector.broadcast %40 : vector<1x32xf32> to vector<16x32xf32>
      %42 = arith.addf %39, %41 : vector<16x32xf32>
      %43 = arith.truncf %42 : vector<16x32xf32> to vector<16x32xbf16>
      %c0_25 = arith.constant 0 : index
      %c0_26 = arith.constant 0 : index
      %44 = vector.load %arg8[%c0_25, %c0_26] : memref<16x32xbf16, #tpu.memory_space<vmem>>, vector<16x32xbf16>
      tpu.vector_store %arg8[%c0_25, %c0_26], %43 {strides = array<i32>} : memref<16x32xbf16, #tpu.memory_space<vmem>>, vector<16x32xbf16>,
    } else {
    }
    return
  }
  func.func @transform_0(%arg0: i32, %arg1: i32) -> (i32, i32) {
    %c0_i32 = arith.constant 0 : i32
    return %arg0, %arg1 : i32, i32
  }
  func.func @transform_1(%arg0: i32, %arg1: i32) -> (i32, i32) {
    %c0_i32 = arith.constant 0 : i32
    %c0_i32_0 = arith.constant 0 : i32
    return %arg1, %c0_i32 : i32, i32
  }
  func.func @transform_2(%arg0: i32, %arg1: i32) -> (i32, i32) {
    %c0_i32 = arith.constant 0 : i32
    %c0_i32_0 = arith.constant 0 : i32
    %c0_i32_1 = arith.constant 0 : i32
    return %c0_i32, %c0_i32_0 : i32, i32
  }
  func.func @transform_3(%arg0: i32, %arg1: i32) -> (i32, i32) {
    %c0_i32 = arith.constant 0 : i32
    %c0_i32_0 = arith.constant 0 : i32
    return %arg0, %c0_i32 : i32, i32
  }
  func.func @transform_4(%arg0: i32, %arg1: i32) -> (i32, i32) {
    %c0_i32 = arith.constant 0 : i32
    %c0_i32_0 = arith.constant 0 : i32
    %c0_i32_1 = arith.constant 0 : i32
    return %c0_i32, %c0_i32_0 : i32, i32
  }
  func.func @transform_5(%arg0: i32, %arg1: i32) -> (i32, i32) {
    %c0_i32 = arith.constant 0 : i32
    %c0_i32_0 = arith.constant 0 : i32
    %c0_i32_1 = arith.constant 0 : i32
    return %c0_i32, %c0_i32_0 : i32, i32
  }
  func.func @transform_6(%arg0: i32, %arg1: i32) -> (i32, i32) {
    %c0_i32 = arith.constant 0 : i32
    %c0_i32_0 = arith.constant 0 : i32
    return %arg0, %c0_i32 : i32, i32
  }
}

module attributes {stable_mosaic.version = 11 : i64} {
  func.func @_matmul_bias_kernel(%arg0: i32, %arg1: i32, %arg2: i32, %arg3: memref<16x32xbf16, #tpu.memory_space<vmem>>, %arg4: memref<32x50xbf16, #tpu.memory_space<vmem>>, %arg5: memref<1x50xf32, #tpu.memory_space<vmem>>, %arg6: memref<16x50xf32, #tpu.memory_space<vmem>>, %arg7: memref<16x50xf32, #tpu.memory_space<vmem>>) attributes {dimension_semantics = [#tpu.dimension_semantics<parallel>, #tpu.dimension_semantics<parallel>, #tpu.dimension_semantics<arbitrary>], iteration_bounds = array<i64: 1, 1, 1>, scalar_prefetch = 0 : i64, scratch_operands = 1 : i64, tpu.core_type = #tpu.core_type<tc>, window_params = [{transform_indices = @transform_0, window_bounds = array<i64: 16, 32>}, {transform_indices = @transform_1, window_bounds = array<i64: 32, 50>}, {transform_indices = @transform_2, window_bounds = array<i64: 1, 50>}, {transform_indices = @transform_3, window_bounds = array<i64: 16, 50>}]} {
    %c0_i32 = arith.constant 0 : i32
    %0 = arith.cmpi eq, %arg2, %c0_i32 : i32
    %1 = arith.extui %0 : i1 to i32
    %c0_i32_0 = arith.constant 0 : i32
    %2 = arith.cmpi ne, %1, %c0_i32_0 : i32
    scf.if %2 {
      %cst_10 = arith.constant 0.000000e+00 : f32
      %12 = vector.broadcast %cst_10 : f32 to vector<16x50xf32>
      %c0_11 = arith.constant 0 : index
      %c0_12 = arith.constant 0 : index
      %13 = vector.load %arg7[%c0_11, %c0_12] : memref<16x50xf32, #tpu.memory_space<vmem>>, vector<16x50xf32>
      tpu.vector_store %arg7[%c0_11, %c0_12], %12 {strides = array<i32>} : memref<16x50xf32, #tpu.memory_space<vmem>>, vector<16x50xf32>,
    } else {
    }
    %c0 = arith.constant 0 : index
    %c0_1 = arith.constant 0 : index
    %3 = vector.load %arg7[%c0, %c0_1] : memref<16x50xf32, #tpu.memory_space<vmem>>, vector<16x50xf32>
    %c0_2 = arith.constant 0 : index
    %c0_3 = arith.constant 0 : index
    %4 = vector.load %arg3[%c0_2, %c0_3] : memref<16x32xbf16, #tpu.memory_space<vmem>>, vector<16x32xbf16>
    %c0_4 = arith.constant 0 : index
    %c0_5 = arith.constant 0 : index
    %5 = vector.load %arg4[%c0_4, %c0_5] : memref<32x50xbf16, #tpu.memory_space<vmem>>, vector<32x50xbf16>
    %cst = arith.constant dense<0.000000e+00> : vector<16x50xf32>
    %6 = tpu.matmul %4, %5, %cst {dimension_numbers = #tpu.dot_dimension_numbers<[1], [0], [0], [1], [0, 0, 1, 1], [], []>} : vector<16x32xbf16>, vector<32x50xbf16>, vector<16x50xf32> -> vector<16x50xf32>
    %7 = arith.addf %3, %6 : vector<16x50xf32>
    %c0_6 = arith.constant 0 : index
    %c0_7 = arith.constant 0 : index
    %8 = vector.load %arg7[%c0_6, %c0_7] : memref<16x50xf32, #tpu.memory_space<vmem>>, vector<16x50xf32>
    tpu.vector_store %arg7[%c0_6, %c0_7], %7 {strides = array<i32>} : memref<16x50xf32, #tpu.memory_space<vmem>>, vector<16x50xf32>,
    %c0_i32_8 = arith.constant 0 : i32
    %9 = arith.cmpi eq, %arg2, %c0_i32_8 : i32
    %10 = arith.extui %9 : i1 to i32
    %c0_i32_9 = arith.constant 0 : i32
    %11 = arith.cmpi ne, %10, %c0_i32_9 : i32
    scf.if %11 {
      %c0_10 = arith.constant 0 : index
      %c0_11 = arith.constant 0 : index
      %12 = vector.load %arg7[%c0_10, %c0_11] : memref<16x50xf32, #tpu.memory_space<vmem>>, vector<16x50xf32>
      %c0_12 = arith.constant 0 : index
      %c0_13 = arith.constant 0 : index
      %13 = vector.load %arg5[%c0_12, %c0_13] : memref<1x50xf32, #tpu.memory_space<vmem>>, vector<1x50xf32>
      %14 = vector.broadcast %13 : vector<1x50xf32> to vector<16x50xf32>
      %15 = arith.addf %12, %14 : vector<16x50xf32>
      %c0_14 = arith.constant 0 : index
      %c0_15 = arith.constant 0 : index
      %16 = vector.load %arg6[%c0_14, %c0_15] : memref<16x50xf32, #tpu.memory_space<vmem>>, vector<16x50xf32>
      tpu.vector_store %arg6[%c0_14, %c0_15], %15 {strides = array<i32>} : memref<16x50xf32, #tpu.memory_space<vmem>>, vector<16x50xf32>,
    } else {
    }
    return
  }
  func.func @transform_0(%arg0: i32, %arg1: i32, %arg2: i32) -> (i32, i32) {
    %c0_i32 = arith.constant 0 : i32
    return %arg0, %arg2 : i32, i32
  }
  func.func @transform_1(%arg0: i32, %arg1: i32, %arg2: i32) -> (i32, i32) {
    %c0_i32 = arith.constant 0 : i32
    return %arg2, %arg1 : i32, i32
  }
  func.func @transform_2(%arg0: i32, %arg1: i32, %arg2: i32) -> (i32, i32) {
    %c0_i32 = arith.constant 0 : i32
    %c0_i32_0 = arith.constant 0 : i32
    return %c0_i32, %arg1 : i32, i32
  }
  func.func @transform_3(%arg0: i32, %arg1: i32, %arg2: i32) -> (i32, i32) {
    %c0_i32 = arith.constant 0 : i32
    return %arg0, %arg1 : i32, i32
  }
}

</mosaic_0001>

<bundles_post_ra>
// kernel: decoder_forward.20
= control target key start
LH: loop header
LB: loop body
LE: loop exit
PB: predicated region body
PF: predicated region fallthrough
CT: control target
= control target key end

     0   :  { %s543_s9 = smov 0   ;;  %s615_s0 = inlined_call_operand.vmem [shape: bf16[2,8,96], index: 0, kind: input, shape index: {}]   ;;  %s616_s1 = inlined_call_operand.vmem [shape: f32[1,8,8], index: 1, kind: input, shape index: {}]   ;;  %s617_s2 = inlined_call_operand.vmem [shape: bf16[2,8,32], index: 2, kind: output, shape index: {}]  }
   0x1 LB: > { %s451_s10 = sadd.s32 4294967295, %s512_s9   ;;  %p455_p0 = scmp.ge.s32.totalorder %s512_s9, 1  ;;  %s512_s9 = sphi %s543_s9, %s12_s9  }
   0x2   : > { %p111_p1 = scmp.lt.s32.totalorder %s512_s9, 3 }
   0x4   : > { %p112_p2 = pnand %p455_p0, %p111_p1 }
   0x5   : > { %p131_p3 = scmp.lt.s32.totalorder (!%p112_p2), %s451_s10, 1  ;;  %s514_s15 = smov (!%p112_p2), 96  }
   0x6   : > { %115 = sbr.rel (%p112_p2) target bundleno = 1199 (0x4af), region = 28  ;;  %s515_s16 = smov (!%p112_p2), 88  }
   0x7   : > { %s516_s17 = smov (!%p112_p2), 120   ;;  %s517_s18 = smov (!%p112_p2), 64  }
   0x8   : > { %s518_s19 = smov (!%p112_p2), 80   ;;  %s519_s20 = smov (!%p112_p2), 72  }
   0x9   : > { %s520_s21 = smov (!%p112_p2), 112   ;;  %s521_s22 = smov (!%p112_p2), 104  }
   0xa   : > { %s522_s25 = smov (!%p112_p2), 56   ;;  %s523_s26 = smov (!%p112_p2), 40  }
   0xb   : > { %s619_s10 = smov (!%p131_p3, %s451_s10), 1  ;;  %vm147_vm0 = vcmask 64512   ;;  %v141_v8 = vld [vmem:[%s616_s1] sm:$0xff]  ;;  %vm187_vm2 = vcmask 1043456   ;;  %s524_s27 = smov 48   ;;  %vm391_vm3 = vcmask 130048  }
   0xc   : > { %s456_s11 = sshll.u32 %s619_s10, 2  ;;  %vm168_vm1 = vcmp.gt.f32.partialorder %v141_v8, 0.0  ;;  %s525_s28 = smov 8   ;;  %vm393_vm4 = vcmask 195584   ;;  %vm396_vm5 = vcmask 257024  }
   0xd   : > { %s134_s14 = scalar_lea.vmem %s615_s0, %s456_s11  ;;  %s526_s29 = smov 16  }
   0xe   : > { %v140_v0 = vld [vmem:[%s134_s14] sm:$0xf]  ;;  %s527_s30 = smov 24   ;;  %s138_s5 = scalar_lea.vmem %s617_s2, %s456_s11 }
   0xf   : > { %v143_v1 = vunpack.c.l.b16 %v140_v0 }
  0x11   : > { %v559_v2 = vpack.c.b16 %v143_v1, %v143_v1 }
  0x13   : > { %145 = vrot.lane.b32.xlu0 %v559_v2, %s514_s15  ;;  %206 = vrot.lane.b32.xlu1 %v559_v2, %s515_s16 }
  0x14   : > { %204 = vrot.lane.b32.xlu2 %v559_v2, %s516_s17 }
  0x1c   : > { %182 = vrot.lane.b32.xlu2 %v559_v2, %s517_s18 }
  0x24   : > { %264 = vrot.lane.b32.xlu2 %v559_v2, %s518_s19 }
  0x2c   : > { %322 = vrot.lane.b32.xlu2 %v559_v2, %s519_s20 }
  0x34   : > { %262 = vrot.lane.b32.xlu2 %v559_v2, %s520_s21 }
  0x3c   : > { %320 = vrot.lane.b32.xlu2 %v559_v2, %s521_s22 }
  0x6e   : > { %v205_v7 = vpop.permute.xlu2 %204 }
  0x76   : > { %v183_v14 = vpop.permute.xlu2 %182 }
  0x77   : > { %v189_v19 = vsel %vm187_vm2, %v183_v14, 0 }
  0x78   : > { %198 = vmatpush.bf16.msra.mxu1 %v189_v19 }
  0x7e   : > { %v265_v15 = vpop.permute.xlu2 %264 }
  0x7f   : > { %v270_v17 = vsel %vm147_vm0, %v265_v15, 0 }
  0x80   : > { %279 = vmatpush.bf16.xpose.msrb.mxu1 %v270_v17 }
  0x85   : > { %v146_v3 = vpop.permute.xlu0 %145  ;;  %v207_v5 = vpop.permute.xlu1 %206 }
  0x86   : > { %v152_v4 = vsel %vm147_vm0, %v146_v3, 0  ;;  %v212_v6 = vsel %vm147_vm0, %v207_v5, 0  ;;  %v323_v16 = vpop.permute.xlu2 %322 }
  0x87   : > { %161 = vmatpush.bf16.xpose.msra.mxu0 %v152_v4  ;;  %221 = vmatpush.bf16.xpose.msra.mxu2 %v212_v6  ;;  %v328_v18 = vsel %vm147_vm0, %v323_v16, 0 }
  0x8e   : > { %458 = vmatmul.msk.bf16.vlgmr.msra.gmra.mxu0 %vm147_vm0, %v140_v0  ;;  %460 = vmatmul.msk.bf16.vlgmr.msra.gmra.mxu2 %vm147_vm0, %v205_v7  ;;  %v263_v20 = vpop.permute.xlu2 %262 }
  0x8f   : > { %337 = vmatpush.bf16.xpose.msrb.mxu0 %v328_v18 }
  0x96   : > { %v321_v22 = vpop.permute.xlu2 %320 }
  0x9e   : > { %464 = vmatmul.msk.bf16.vlgmr.msrb.gmra.mxu0 %vm147_vm0, %v321_v22 }
 0x10b   : > { %v163_v9 = vpop.f32.mrf.mxu0 }
 0x10c   : > { %v167_v10 = vmul.f32 0.35355338, %v163_v9 }
 0x10e   : > { %v169_v11 = vsel %vm168_vm1, %v167_v10, -10000.0 }
 0x10f   : > { %v170_v12 = vsel %vm147_vm0, %v169_v11, -inf }
 0x110   : > { %171 = vmax.xlane.f32.xlu0 %v170_v12 }
 0x111   : > { %v223_v21 = vpop.f32.mrf.mxu2 }
 0x112   : > { %v227_v23 = vmul.f32 0.35355338, %v223_v21 }
 0x113   : > { %v165_v13 = vpop.f32.mrf.mxu0 }
 0x114   : > { %v228_v24 = vsel %vm168_vm1, %v227_v23, -10000.0 }
 0x115   : > { %v229_v26 = vsel %vm147_vm0, %v228_v24, -inf }
 0x116   : > { %230 = vmax.xlane.f32.xlu2 %v229_v26 }
 0x119   : > { %v225_v29 = vpop.f32.mrf.mxu2 }
 0x11b   : > { %v339_v32 = vpop.f32.mrf.mxu0 }
 0x11c   : > { %v343_v33 = vmul.f32 0.35355338, %v339_v32 }
 0x11e   : > { %v344_v34 = vsel %vm168_vm1, %v343_v33, -10000.0 }
 0x11f   : > { %v345_v36 = vsel %vm147_vm0, %v344_v34, -inf }
 0x123   : > { %v341_v37 = vpop.f32.mrf.mxu0 }
 0x183   : > { %v172_v25 = vpop.xlane.xlu0 %171 }
 0x184   : > { %v173_v27 = vsub.f32 %v169_v11, %v172_v25 }
 0x186   : > { %v174_v28 = vmul.f32 1.442695, %v173_v27 }
 0x188   : > { %490 = vpow2.f32 %v174_v28 }
 0x189   : > { %v231_v42 = vpop.xlane.xlu2 %230 }
 0x18a   : > { %v232_v44 = vsub.f32 %v228_v24, %v231_v42 }
 0x18c   : > { %v233_v45 = vmul.f32 1.442695, %v232_v44 }
 0x18e   : > { %v491_v30 = vpop.eup %490 }
 0x18f   : > { %v176_v31 = vsel %vm147_vm0, %v491_v30, 0.0 }
 0x190   : > { %177 = vadd.xlane.f32.xlu1 %v176_v31 }
 0x198   : > { %346 = vmax.xlane.f32.xlu1 %v345_v36 }
 0x1b1   : > { %241 = vrot.lane.b32.xlu1 %v559_v2, %s522_s25 }
 0x1b9   : > { %357 = vrot.lane.b32.xlu1 %v559_v2, %s523_s26 }
 0x203   : > { %v178_v35 = vpop.xlane.xlu1 %177 }
 0x204   : > { %492 = vrcp.f32 %v178_v35 }
 0x205   : > { %494 = vpow2.f32 %v233_v45 }
 0x20a   : > { %v493_v38 = vpop.eup %492 }
 0x20b   : > { %v180_v39 = vmul.f32 %v493_v38, %v491_v30  ;;  %v347_v46 = vpop.xlane.xlu1 %346  ;;  %v495_v54 = vpop.eup %494 }
 0x20c   : > { %v348_v49 = vsub.f32 %v344_v34, %v347_v46  ;;  %v235_v55 = vsel %vm147_vm0, %v495_v54, 0.0 }
 0x20d   : > { %v181_v40 = vpack.c.bf16 %v180_v39, %v180_v39 }
 0x20e   : > { %v349_v52 = vmul.f32 1.442695, %v348_v49 }
 0x20f   : > { %459 = vmatmul.msk.bf16.vlgmr.msra.gmra.mxu1 %vm147_vm0, %v181_v40 }
 0x210   : > { %496 = vpow2.f32 %v349_v52 }
 0x216   : > { %v497_v56 = vpop.eup %496 }
 0x217   : > { %v351_v57 = vsel %vm147_vm0, %v497_v56, 0.0 }
 0x21f   : > { %462 = vmatmul.msk.bf16.vlgmr.msrb.gmra.mxu1 %vm147_vm0, %v263_v20 }
 0x223   : > { %v242_v58 = vpop.permute.xlu1 %241 }
 0x224   : > { %v247_v59 = vsel %vm187_vm2, %v242_v58, 0 }
 0x225   : > { %256 = vmatpush.bf16.msra.mxu3 %v247_v59 }
 0x22b   : > { %v358_v60 = vpop.permute.xlu1 %357 }
 0x22c   : > { %v363_v61 = vsel %vm187_vm2, %v358_v60, 0 }
 0x22d   : > { %372 = vmatpush.bf16.msrb.mxu2 %v363_v61 }
 0x28c   : > { %v591_v41 = vpop.f32.mrf.mxu1 }
 0x294   : > { %v202_v43 = vpop.f32.mrf.mxu1 }
 0x29c   : > { %v281_v47 = vpop.f32.mrf.mxu1 }
 0x29d   : > { %v285_v48 = vmul.f32 0.35355338, %v281_v47 }
 0x29f   : > { %v286_v50 = vsel %vm168_vm1, %v285_v48, -10000.0 }
 0x2a0   : > { %v287_v51 = vsel %vm147_vm0, %v286_v50, -inf }
 0x2a1   : > { %288 = vmax.xlane.f32.xlu0 %v287_v51 }
 0x2a4   : > { %v283_v53 = vpop.f32.mrf.mxu1 }
 0x2a9   : > { %236 = vadd.xlane.f32.xlu0 %v235_v55 }
 0x2b1   : > { %352 = vadd.xlane.f32.xlu0 %v351_v57 }
 0x314   : > { %v289_v62 = vpop.xlane.xlu0 %288 }
 0x315   : > { %v290_v63 = vsub.f32 %v286_v50, %v289_v62 }
 0x317   : > { %v291_v0 = vmul.f32 1.442695, %v290_v63 }
 0x319   : > { %498 = vpow2.f32 %v291_v0 }
 0x31c   : > { %v237_v1 = vpop.xlane.xlu0 %236 }
 0x31d   : > { %500 = vrcp.f32 %v237_v1 }
 0x31f   : > { %v499_v3 = vpop.eup %498 }
 0x320   : > { %v293_v4 = vsel %vm147_vm0, %v499_v3, 0.0 }
 0x321   : > { %294 = vadd.xlane.f32.xlu0 %v293_v4 }
 0x323   : > { %v501_v5 = vpop.eup %500 }
 0x324   : > { %v353_v6 = vpop.xlane.xlu0 %352  ;;  %v239_v7 = vmul.f32 %v501_v5, %v495_v54 }
 0x325   : > { %502 = vrcp.f32 %v353_v6 }
 0x326   : > { %v240_v8 = vpack.c.bf16 %v239_v7, %v239_v7 }
 0x328   : > { %461 = vmatmul.msk.bf16.vlgmr.msra.gmra.mxu3 %vm147_vm0, %v240_v8 }
 0x32b   : > { %v503_v9 = vpop.eup %502 }
 0x32c   : > { %v355_v10 = vmul.f32 %v503_v9, %v497_v56 }
 0x32e   : > { %v356_v11 = vpack.c.bf16 %v355_v10, %v355_v10 }
 0x330   : > { %465 = vmatmul.msk.bf16.vlgmr.msrb.gmra.mxu2 %vm147_vm0, %v356_v11 }
 0x335   : > { %299 = vrot.lane.b32.xlu0 %v559_v2, %s524_s27 }
 0x394   : > { %v295_v12 = vpop.xlane.xlu0 %294 }
 0x395   : > { %504 = vrcp.f32 %v295_v12 }
 0x39b   : > { %v505_v13 = vpop.eup %504 }
 0x39c   : > { %v297_v14 = vmul.f32 %v505_v13, %v499_v3 }
 0x39e   : > { %v298_v17 = vpack.c.bf16 %v297_v14, %v297_v14 }
 0x3a7   : > { %v300_v15 = vpop.permute.xlu0 %299 }
 0x3a8   : > { %v305_v16 = vsel %vm187_vm2, %v300_v15, 0 }
 0x3a9   : > { %314 = vmatpush.bf16.msrb.mxu3 %v305_v16 }
 0x3ab   : > { %v258_v18 = vpop.f32.mrf.mxu3 }
 0x3ac   : > { %463 = vmatmul.msk.bf16.vlgmr.msrb.gmra.mxu3 %vm147_vm0, %v298_v17  ;;  %379 = vrot.lane.b32.xlu2 %v258_v18, %s525_s28 }
 0x3b3   : > { %v260_v19 = vpop.f32.mrf.mxu3  ;;  %v374_v20 = vpop.f32.mrf.mxu2 }
 0x3bb   : > { %v376_v21 = vpop.f32.mrf.mxu2 }
 0x406   : > { %v380_v24 = vpop.permute.xlu2 %379 }
 0x407   : > { %v390_v25 = vsel %vm147_vm0, %v591_v41, %v380_v24 }
 0x42f   : > { %v316_v22 = vpop.f32.mrf.mxu3 }
 0x430   : > { %383 = vrot.lane.b32.xlu1 %v316_v22, %s526_s29 }
 0x437   : > { %v318_v2 = vpop.f32.mrf.mxu3 }
 0x438   : > { %387 = vrot.lane.b32.xlu1 %v374_v20, %s527_s30 }
 0x4a2   : > { %v384_v23 = vpop.permute.xlu1 %383 }
 0x4a3   : > { %v392_v26 = vsel %vm391_vm3, %v390_v25, %v384_v23 }
 0x4aa   : > { %v388_v27 = vpop.permute.xlu1 %387 }
 0x4ab   : > { %v394_v28 = vsel %vm393_vm4, %v392_v26, %v388_v27 }
 0x4ac   : > { %v395_v29 = vpack.c.bf16 %v394_v28, %v394_v28 }
 0x4ae   : > { %397 = vst.msk [vmem:[%s138_s5] sm:$0xf] %vm396_vm5, %v395_v29 }
 0x4af PF: > { %s12_s9 = sadd.s32 1, %s512_s9  }
 0x4b0   : > { %p9_p4 = scmp.ge.s32.totalorder %s12_s9, 4  }
 0x4b2   :  { %11 = sbr.rel (!%p9_p4) target bundleno = 1 (0x1), region = 58 }

// kernel: decoder_forward.22
= control target key start
LH: loop header
LB: loop body
LE: loop exit
PB: predicated region body
PF: predicated region fallthrough
CT: control target
= control target key end

     0   :  { %vm19_vm0 = vcmask 261120   ;;  %v107_v1 = vmov 0.0   ;;  %vm82_vm1 = vcmask 257024   ;;  %s151_s1 = inlined_call_operand.vmem [shape: bf16[32,32], index: 1, kind: input, shape index: {}]   ;;  %s152_s2 = inlined_call_operand.vmem [shape: f32[1,32], index: 2, kind: input, shape index: {}]   ;;  %s153_s0 = inlined_call_operand.vmem [shape: bf16[16,32], index: 0, kind: input, shape index: {}]   ;;  %s154_s3 = inlined_call_operand.vmem [shape: bf16[16,32], index: 3, kind: output, shape index: {}]  }
   0x1   :  { %v104_v0 = vld [vmem:[%s151_s1 + $0x8] sm:$0xff]  ;;  %20 = vst.msk [vmem:[#allocation2] sm:$0xff] %vm19_vm0, %v107_v1  ;;  %v103_v2 = vld [vmem:[%s151_s1] sm:$0xff] }
   0x2   :  { %21 = vst.msk [vmem:[#allocation2 + $0x8] sm:$0xff] %vm19_vm0, %v107_v1  ;;  %57 = vmatpush.bf16.msra.mxu0 %v104_v0  ;;  %v102_v3 = vld [vmem:[%s153_s0] sm:$0xff] }
   0x3   :  { %v106_v8 = vld [vmem:[%s152_s2] ss:$0 sm:$0xff] }
   0x6   :  { %58 = vmatpush.bf16.msra.mxu0 %v103_v2 }
   0x8   :  { %v22_v4 = vld [vmem:[#allocation2] sm:$0xff] }
   0x9   :  { %101 = vmatmul.msk.bf16.vlgmr.msra.gmra.mxu0 %vm19_vm0, %v102_v3  ;;  %v23_v7 = vld [vmem:[#allocation2 + $0x8] sm:$0xff] }
  0x86   :  { %v60_v5 = vpop.f32.mrf.mxu0 }
  0x87   :  { %v65_v6 = vadd.f32 %v60_v5, %v22_v4 }
  0x89   :  { %67 = vst.msk [vmem:[#allocation2] sm:$0xff] %vm19_vm0, %v65_v6 }
  0x8e   :  { %v62_v9 = vpop.f32.mrf.mxu0 }
  0x8f   :  { %v66_v10 = vadd.f32 %v62_v9, %v23_v7 }
  0x90   :  { %v72_v11 = vld [vmem:[#allocation2] sm:$0xff] }
  0x91   :  { %v78_v12 = vadd.f32 %v106_v8, %v72_v11  ;;  %68 = vst.msk [vmem:[#allocation2 + $0x8] sm:$0xff] %vm19_vm0, %v66_v10 }
  0x93   :  { %v80_v13 = vpack.c.bf16 %v78_v12, %v78_v12 }
  0x95   :  { %83 = vst.msk [vmem:[%s154_s3] sm:$0xf] %vm82_vm1, %v80_v13 }
  0x98   :  { %v73_v14 = vld [vmem:[#allocation2 + $0x8] sm:$0xff] }
  0x99   :  { %v79_v15 = vadd.f32 %v106_v8, %v73_v14 }
  0x9b   :  { %v81_v16 = vpack.c.bf16 %v79_v15, %v79_v15 }
  0x9d   :  { %84 = vst.msk [vmem:[%s154_s3 + $0x4] sm:$0xf] %vm82_vm1, %v81_v16 }

// kernel: decoder_forward.19
= control target key start
LH: loop header
LB: loop body
LE: loop exit
PB: predicated region body
PF: predicated region fallthrough
CT: control target
= control target key end

     0   :  { %vm19_vm0 = vcmask 785408   ;;  %v108_v1 = vmov 0.0   ;;  %vm47_vm1 = vcmask 261120   ;;  %vm83_vm2 = vcmask 781312   ;;  %s151_s1 = inlined_call_operand.vmem [shape: bf16[32,96], index: 1, kind: input, shape index: {}]   ;;  %s152_s2 = inlined_call_operand.vmem [shape: f32[1,96], index: 2, kind: input, shape index: {}]   ;;  %s153_s0 = inlined_call_operand.vmem [shape: bf16[16,32], index: 0, kind: input, shape index: {}]   ;;  %s154_s3 = inlined_call_operand.vmem [shape: bf16[16,96], index: 3, kind: output, shape index: {}]  }
   0x1   :  { %v105_v0 = vld [vmem:[%s151_s1 + $0x8] sm:$0xff]  ;;  %20 = vst.msk [vmem:[#allocation2] sm:$0xff] %vm19_vm0, %v108_v1  ;;  %v104_v2 = vld [vmem:[%s151_s1] sm:$0xff] }
   0x2   :  { %21 = vst.msk [vmem:[#allocation2 + $0x8] sm:$0xff] %vm19_vm0, %v108_v1  ;;  %57 = vmatpush.bf16.msra.mxu0 %v105_v0  ;;  %v103_v3 = vld [vmem:[%s153_s0] sm:$0xff] }
   0x3   :  { %v107_v8 = vld [vmem:[%s152_s2] ss:$0 sm:$0xff] }
   0x6   :  { %58 = vmatpush.bf16.msra.mxu0 %v104_v2 }
   0x8   :  { %v22_v4 = vld [vmem:[#allocation2] sm:$0xff] }
   0x9   :  { %102 = vmatmul.msk.bf16.vlgmr.msra.gmra.mxu0 %vm47_vm1, %v103_v3  ;;  %v23_v7 = vld [vmem:[#allocation2 + $0x8] sm:$0xff] }
  0x86   :  { %v60_v5 = vpop.f32.mrf.mxu0 }
  0x87   :  { %v65_v6 = vadd.f32 %v60_v5, %v22_v4 }
  0x89   :  { %68 = vst.msk [vmem:[#allocation2] sm:$0xff] %vm19_vm0, %v65_v6 }
  0x8e   :  { %v62_v9 = vpop.f32.mrf.mxu0 }
  0x8f   :  { %v66_v10 = vadd.f32 %v62_v9, %v23_v7 }
  0x90   :  { %v73_v11 = vld [vmem:[#allocation2] sm:$0xff] }
  0x91   :  { %v79_v12 = vadd.f32 %v107_v8, %v73_v11  ;;  %69 = vst.msk [vmem:[#allocation2 + $0x8] sm:$0xff] %vm19_vm0, %v66_v10 }
  0x93   :  { %v81_v13 = vpack.c.bf16 %v79_v12, %v79_v12 }
  0x95   :  { %84 = vst.msk [vmem:[%s154_s3] sm:$0xf] %vm83_vm2, %v81_v13 }
  0x98   :  { %v74_v14 = vld [vmem:[#allocation2 + $0x8] sm:$0xff] }
  0x99   :  { %v80_v15 = vadd.f32 %v107_v8, %v74_v14 }
  0x9b   :  { %v82_v16 = vpack.c.bf16 %v80_v15, %v80_v15 }
  0x9d   :  { %85 = vst.msk [vmem:[%s154_s3 + $0x4] sm:$0xf] %vm83_vm2, %v82_v16 }

// kernel: decoder_forward.21
= control target key start
LH: loop header
LB: loop body
LE: loop exit
PB: predicated region body
PF: predicated region fallthrough
CT: control target
= control target key end

     0   :  { %vm28_vm0 = vcmask 261120   ;;  %v198_v1 = vmov 0.0   ;;  %v199_v22 = vmov 32.0   ;;  %vm160_vm6 = vcmask 257024   ;;  %s271_s1 = inlined_call_operand.vmem [shape: bf16[32,32], index: 1, kind: input, shape index: {}]   ;;  %s272_s0 = inlined_call_operand.vmem [shape: bf16[16,32], index: 0, kind: input, shape index: {}]   ;;  %s273_s2 = inlined_call_operand.vmem [shape: f32[1,32], index: 2, kind: input, shape index: {}]   ;;  %s274_s3 = inlined_call_operand.vmem [shape: bf16[16,32], index: 3, kind: input, shape index: {}]   ;;  %s275_s4 = inlined_call_operand.vmem [shape: f32[1,32], index: 4, kind: input, shape index: {}]   ;;  %s276_s5 = inlined_call_operand.vmem [shape: f32[1,32], index: 5, kind: input, shape index: {}]   ;;  %s277_s6 = inlined_call_operand.vmem [shape: bf16[16,32], index: 6, kind: output, shape index: {}]  }
   0x1   :  { %v182_v0 = vld [vmem:[%s271_s1 + $0x8] sm:$0xff]  ;;  %29 = vst.msk [vmem:[#allocation2] sm:$0xff] %vm28_vm0, %v198_v1  ;;  %v181_v2 = vld [vmem:[%s271_s1] sm:$0xff]  ;;  %192 = vrcp.f32 %v199_v22 }
   0x2   :  { %30 = vst.msk [vmem:[#allocation2 + $0x8] sm:$0xff] %vm28_vm0, %v198_v1  ;;  %66 = vmatpush.bf16.msra.mxu0 %v182_v0  ;;  %v180_v3 = vld [vmem:[%s272_s0] sm:$0xff] }
   0x3   :  { %v184_v8 = vld [vmem:[%s274_s3] sm:$0xff]  }
   0x4   :  { %v189_v9 = vld [vmem:[%s273_s2] ss:$0 sm:$0xff]  ;;  %v185_v12 = vunpack.c.l.bf16 %v184_v8  ;;  %v186_v17 = vunpack.c.h.bf16 %v184_v8 }
   0x5   :  { %v190_v53 = vld [vmem:[%s275_s4] ss:$0 sm:$0xff] }
   0x6   :  { %67 = vmatpush.bf16.msra.mxu0 %v181_v2  ;;  %v191_v56 = vld [vmem:[%s276_s5] ss:$0 sm:$0xff] }
   0x7   :  { %v193_v23 = vpop.eup %192 }
   0x8   :  { %v31_v4 = vld [vmem:[#allocation2] sm:$0xff]  ;;  %v102_v24 = vmul.f32 32.0, %v193_v23  ;;  %vm106_vm1 = vweird.f32 %v193_v23 }
   0x9   :  { %179 = vmatmul.msk.bf16.vlgmr.msra.gmra.mxu0 %vm28_vm0, %v180_v3  ;;  %v32_v7 = vld [vmem:[#allocation2 + $0x8] sm:$0xff] }
   0xa   :  { %v103_v25 = vsub.f32 1.0, %v102_v24 }
   0xc   :  { %v104_v26 = vmul.f32 %v193_v23, %v103_v25 }
   0xe   :  { %v105_v27 = vadd.f32 %v193_v23, %v104_v26 }
  0x10   :  { %v107_v28 = vsel %vm106_vm1, %v193_v23, %v105_v27 }
  0x86   :  { %v69_v5 = vpop.f32.mrf.mxu0 }
  0x87   :  { %v74_v6 = vadd.f32 %v69_v5, %v31_v4 }
  0x89   :  { %76 = vst.msk [vmem:[#allocation2] sm:$0xff] %vm28_vm0, %v74_v6 }
  0x8e   :  { %v71_v10 = vpop.f32.mrf.mxu0 }
  0x8f   :  { %v75_v11 = vadd.f32 %v71_v10, %v32_v7 }
  0x90   :  { %v81_v13 = vld [vmem:[#allocation2] sm:$0xff] }
  0x91   :  { %77 = vst.msk [vmem:[#allocation2 + $0x8] sm:$0xff] %vm28_vm0, %v75_v11  ;;  %v87_v14 = vadd.f32 %v189_v9, %v81_v13 }
  0x93   :  { %v93_v15 = vadd.f32 %v185_v12, %v87_v14 }
  0x95   :  { %v95_v16 = vsel %vm28_vm0, %v93_v15, 0.0 }
  0x96   :  { %96 = vadd.xlane.f32.xlu0 %v95_v16 }
  0x98   :  { %v82_v18 = vld [vmem:[#allocation2 + $0x8] sm:$0xff] }
  0x99   :  { %v88_v19 = vadd.f32 %v189_v9, %v82_v18 }
  0x9b   :  { %v94_v20 = vadd.f32 %v186_v17, %v88_v19 }
  0x9d   :  { %v98_v21 = vsel %vm28_vm0, %v94_v20, 0.0 }
  0x9e   :  { %99 = vadd.xlane.f32.xlu0 %v98_v21 }
 0x109   :  { %v97_v29 = vpop.xlane.xlu0 %96 }
 0x10a   :  { %v108_v30 = vmul.f32 %v107_v28, %v97_v29 }
 0x10c   :  { %v110_v31 = vsub.f32 %v93_v15, %v108_v30 }
 0x10e   :  { %v112_v32 = vmul.f32 %v110_v31, %v110_v31 }
 0x110   :  { %v114_v33 = vsel %vm28_vm0, %v112_v32, 0.0 }
 0x111   :  { %115 = vadd.xlane.f32.xlu1 %v114_v33  ;;  %v100_v34 = vpop.xlane.xlu0 %99 }
 0x112   :  { %v109_v35 = vmul.f32 %v107_v28, %v100_v34 }
 0x114   :  { %v111_v36 = vsub.f32 %v94_v20, %v109_v35 }
 0x116   :  { %v113_v37 = vmul.f32 %v111_v36, %v111_v36 }
 0x118   :  { %v117_v38 = vsel %vm28_vm0, %v113_v37, 0.0 }
 0x119   :  { %118 = vadd.xlane.f32.xlu1 %v117_v38 }
 0x184   :  { %v116_v39 = vpop.xlane.xlu1 %115 }
 0x185   :  { %v120_v40 = vmul.f32 %v116_v39, %v107_v28 }
 0x187   :  { %v122_v41 = vadd.f32 1e-05, %v120_v40 }
 0x189   :  { %194 = vrsqrt.f32 %v122_v41  ;;  %vm130_vm3 = vweird.f32 %v122_v41 }
 0x18c   :  { %v119_v42 = vpop.xlane.xlu1 %118 }
 0x18d   :  { %v121_v43 = vmul.f32 %v119_v42, %v107_v28 }
 0x18f   :  { %v195_v44 = vpop.eup %194  ;;  %v123_v45 = vadd.f32 1e-05, %v121_v43 }
 0x190   :  { %v125_v46 = vmul.f32 %v195_v44, %v122_v41  ;;  %vm131_vm2 = vweird.f32 %v195_v44 }
 0x191   :  { %196 = vrsqrt.f32 %v123_v45  ;;  %vm132_vm4 = vmor %vm130_vm3, %vm131_vm2  ;;  %vm140_vm7 = vweird.f32 %v123_v45 }
 0x192   :  { %v126_v47 = vmul.f32 %v195_v44, %v125_v46 }
 0x194   :  { %v127_v48 = vmul.f32 0.5, %v126_v47 }
 0x196   :  { %v128_v49 = vsub.f32 1.5, %v127_v48 }
 0x197   :  { %v197_v50 = vpop.eup %196 }
 0x198   :  { %v129_v51 = vmul.f32 %v195_v44, %v128_v49  ;;  %v135_v52 = vmul.f32 %v197_v50, %v123_v45  ;;  %vm141_vm5 = vweird.f32 %v197_v50 }
 0x199   :  { %vm142_vm8 = vmor %vm140_vm7, %vm141_vm5 }
 0x19a   :  { %v133_v54 = vsel %vm132_vm4, %v195_v44, %v129_v51  ;;  %v136_v55 = vmul.f32 %v197_v50, %v135_v52 }
 0x19b   :  { %v144_v57 = vmul.f32 %v133_v54, %v110_v31 }
 0x19c   :  { %v137_v58 = vmul.f32 0.5, %v136_v55 }
 0x19d   :  { %v150_v59 = vmul.f32 %v190_v53, %v144_v57 }
 0x19e   :  { %v138_v60 = vsub.f32 1.5, %v137_v58 }
 0x19f   :  { %v156_v61 = vadd.f32 %v191_v56, %v150_v59 }
 0x1a0   :  { %v139_v62 = vmul.f32 %v197_v50, %v138_v60 }
 0x1a1   :  { %v158_v63 = vpack.c.bf16 %v156_v61, %v156_v61 }
 0x1a2   :  { %v143_v0 = vsel %vm142_vm8, %v197_v50, %v139_v62 }
 0x1a3   :  { %161 = vst.msk [vmem:[%s277_s6] sm:$0xf] %vm160_vm6, %v158_v63  ;;  %v145_v1 = vmul.f32 %v143_v0, %v111_v36 }
 0x1a5   :  { %v151_v2 = vmul.f32 %v190_v53, %v145_v1 }
 0x1a7   :  { %v157_v3 = vadd.f32 %v191_v56, %v151_v2 }
 0x1a9   :  { %v159_v4 = vpack.c.bf16 %v157_v3, %v157_v3 }
 0x1ab   :  { %162 = vst.msk [vmem:[%s277_s6 + $0x4] sm:$0xf] %vm160_vm6, %v159_v4 }

// kernel: decoder_forward.23
= control target key start
LH: loop header
LB: loop body
LE: loop exit
PB: predicated region body
PF: predicated region fallthrough
CT: control target
= control target key end

     0   :  { %vm19_vm0 = vcmask 523264   ;;  %v130_v1 = vmov 0.0   ;;  %vm53_vm1 = vcmask 261120   ;;  %vm101_vm2 = vcmask 519168   ;;  %s181_s1 = inlined_call_operand.vmem [shape: bf16[32,64], index: 1, kind: input, shape index: {}]   ;;  %s182_s0 = inlined_call_operand.vmem [shape: bf16[24,32], index: 0, kind: input, shape index: {}]   ;;  %s183_s2 = inlined_call_operand.vmem [shape: f32[1,64], index: 2, kind: input, shape index: {}]   ;;  %s184_s3 = inlined_call_operand.vmem [shape: bf16[24,64], index: 3, kind: output, shape index: {}]  }
   0x1   :  { %v125_v0 = vld [vmem:[%s181_s1 + $0x8] sm:$0xff]  ;;  %20 = vst.msk [vmem:[#allocation2] sm:$0xff] %vm19_vm0, %v130_v1  ;;  %v124_v3 = vld [vmem:[%s181_s1] sm:$0xff] }
   0x2   :  { %v28_v2 = vld [vmem:[%s182_s0 + $0x8] sm:$0xf]  ;;  %21 = vst.msk [vmem:[#allocation2 + $0x8] sm:$0xff] %vm19_vm0, %v130_v1  ;;  %66 = vmatpush.bf16.msra.mxu0 %v125_v0  ;;  %126 = vmatpush.bf16.msra.mxu1 %v125_v0  ;;  %v123_v5 = vld [vmem:[%s182_s0] sm:$0xff] }
   0x3   :  { %v38_v4 = vunpack.c.l.b16 %v28_v2  ;;  %22 = vst.msk [vmem:[#allocation2 + $0x10] sm:$0xff] %vm19_vm0, %v130_v1  ;;  %v129_v14 = vld [vmem:[%s183_s2] ss:$0 sm:$0xff] }
   0x5   :  { %v40_v6 = vpack.c.b16 %v38_v4, %v38_v4 }
   0x6   :  { %67 = vmatpush.bf16.msra.mxu0 %v124_v3  ;;  %127 = vmatpush.bf16.msra.mxu1 %v124_v3 }
   0x8   :  { %v23_v7 = vld [vmem:[#allocation2] sm:$0xff] }
   0x9   :  { %121 = vmatmul.msk.bf16.vlgmr.msra.gmra.mxu0 %vm53_vm1, %v123_v5  ;;  %122 = vmatmul.msk.bf16.vlgmr.msra.gmra.mxu1 %vm53_vm1, %v40_v6  ;;  %v24_v13 = vld [vmem:[#allocation2 + $0x8] sm:$0xff] }
   0xa   :  { %v25_v8 = vld [vmem:[#allocation2 + $0x10] sm:$0xff] }
  0x86   :  { %v69_v9 = vpop.f32.mrf.mxu0  ;;  %v74_v10 = vpop.f32.mrf.mxu1 }
  0x87   :  { %v78_v11 = vadd.f32 %v69_v9, %v23_v7  ;;  %v80_v12 = vadd.f32 %v74_v10, %v25_v8 }
  0x89   :  { %82 = vst.msk [vmem:[#allocation2] sm:$0xff] %vm19_vm0, %v78_v11 }
  0x8a   :  { %84 = vst.msk [vmem:[#allocation2 + $0x10] sm:$0xff] %vm19_vm0, %v80_v12 }
  0x8e   :  { %v71_v15 = vpop.f32.mrf.mxu0  ;;  %v76_v16 = vpop.f32.mrf.mxu1 }
  0x8f   :  { %v79_v17 = vadd.f32 %v71_v15, %v24_v13 }
  0x90   :  { %v88_v18 = vld [vmem:[#allocation2] sm:$0xff] }
  0x91   :  { %v95_v19 = vadd.f32 %v129_v14, %v88_v18  ;;  %v90_v20 = vld [vmem:[#allocation2 + $0x10] sm:$0xff]  ;;  %83 = vst.msk [vmem:[#allocation2 + $0x8] sm:$0xff] %vm19_vm0, %v79_v17 }
  0x92   :  { %v97_v21 = vadd.f32 %v129_v14, %v90_v20 }
  0x93   :  { %v98_v22 = vpack.c.bf16 %v95_v19, %v95_v19 }
  0x94   :  { %v100_v23 = vpack.c.bf16 %v97_v21, %v97_v21 }
  0x95   :  { %102 = vst.msk [vmem:[%s184_s3] sm:$0xf] %vm101_vm2, %v98_v22 }
  0x96   :  { %104 = vst.msk [vmem:[%s184_s3 + $0x8] sm:$0xf] %vm101_vm2, %v100_v23 }
  0x98   :  { %v89_v24 = vld [vmem:[#allocation2 + $0x8] sm:$0xff] }
  0x99   :  { %v96_v25 = vadd.f32 %v129_v14, %v89_v24 }
  0x9b   :  { %v99_v26 = vpack.c.bf16 %v96_v25, %v96_v25 }
  0x9d   :  { %103 = vst.msk [vmem:[%s184_s3 + $0x4] sm:$0xf] %vm101_vm2, %v99_v26 }

// kernel: decoder_forward.26
= control target key start
LH: loop header
LB: loop body
LE: loop exit
PB: predicated region body
PF: predicated region fallthrough
CT: control target
= control target key end

     0   :  { %vm19_vm0 = vcmask 523264   ;;  %v110_v1 = vmov 0.0   ;;  %vm47_vm1 = vcmask 261120   ;;  %vm85_vm2 = vcmask 519168   ;;  %s153_s1 = inlined_call_operand.vmem [shape: bf16[32,64], index: 1, kind: input, shape index: {}]   ;;  %s154_s2 = inlined_call_operand.vmem [shape: f32[1,64], index: 2, kind: input, shape index: {}]   ;;  %s155_s0 = inlined_call_operand.vmem [shape: bf16[16,32], index: 0, kind: input, shape index: {}]   ;;  %s156_s3 = inlined_call_operand.vmem [shape: bf16[16,64], index: 3, kind: output, shape index: {}]  }
   0x1   :  { %v107_v0 = vld [vmem:[%s153_s1 + $0x8] sm:$0xff]  ;;  %20 = vst.msk [vmem:[#allocation2] sm:$0xff] %vm19_vm0, %v110_v1  ;;  %v106_v2 = vld [vmem:[%s153_s1] sm:$0xff] }
   0x2   :  { %21 = vst.msk [vmem:[#allocation2 + $0x8] sm:$0xff] %vm19_vm0, %v110_v1  ;;  %57 = vmatpush.bf16.msra.mxu0 %v107_v0  ;;  %v105_v3 = vld [vmem:[%s155_s0] sm:$0xff] }
   0x3   :  { %v109_v8 = vld [vmem:[%s154_s2] ss:$0 sm:$0xff] }
   0x6   :  { %58 = vmatpush.bf16.msra.mxu0 %v106_v2 }
   0x8   :  { %v22_v4 = vld [vmem:[#allocation2] sm:$0xff] }
   0x9   :  { %104 = vmatmul.msk.bf16.vlgmr.msra.gmra.mxu0 %vm47_vm1, %v105_v3  ;;  %v23_v7 = vld [vmem:[#allocation2 + $0x8] sm:$0xff] }
  0x86   :  { %v60_v5 = vpop.f32.mrf.mxu0 }
  0x87   :  { %v65_v6 = vadd.f32 %v60_v5, %v22_v4 }
  0x89   :  { %68 = vst.msk [vmem:[#allocation2] sm:$0xff] %vm19_vm0, %v65_v6 }
  0x8e   :  { %v62_v9 = vpop.f32.mrf.mxu0 }
  0x8f   :  { %v66_v10 = vadd.f32 %v62_v9, %v23_v7 }
  0x90   :  { %v73_v11 = vld [vmem:[#allocation2] sm:$0xff] }
  0x91   :  { %v79_v12 = vadd.f32 %v109_v8, %v73_v11  ;;  %69 = vst.msk [vmem:[#allocation2 + $0x8] sm:$0xff] %vm19_vm0, %v66_v10 }
  0x93   :  { %v81_v13 = vmax.f32 %v79_v12, 0.0 }
  0x95   :  { %v83_v14 = vpack.c.bf16 %v81_v13, %v81_v13 }
  0x97   :  { %86 = vst.msk [vmem:[%s156_s3] sm:$0xf] %vm85_vm2, %v83_v14 }
  0x98   :  { %v74_v15 = vld [vmem:[#allocation2 + $0x8] sm:$0xff] }
  0x99   :  { %v80_v16 = vadd.f32 %v109_v8, %v74_v15 }
  0x9b   :  { %v82_v17 = vmax.f32 %v80_v16, 0.0 }
  0x9d   :  { %v84_v18 = vpack.c.bf16 %v82_v17, %v82_v17 }
  0x9f   :  { %87 = vst.msk [vmem:[%s156_s3 + $0x4] sm:$0xf] %vm85_vm2, %v84_v18 }

// kernel: decoder_forward.24
= control target key start
LH: loop header
LB: loop body
LE: loop exit
PB: predicated region body
PF: predicated region fallthrough
CT: control target
= control target key end

     0   :  { %s575_s9 = smov 0   ;;  %s641_s0 = inlined_call_operand.vmem [shape: bf16[2,8,32], index: 0, kind: input, shape index: {}]   ;;  %s642_s1 = inlined_call_operand.vmem [shape: bf16[2,12,64], index: 1, kind: input, shape index: {}]   ;;  %s643_s2 = inlined_call_operand.vmem [shape: bf16[2,8,32], index: 2, kind: output, shape index: {}]  }
   0x1 LB: > { %s483_s10 = sadd.s32 4294967295, %s548_s9   ;;  %p487_p0 = scmp.ge.s32.totalorder %s548_s9, 1  ;;  %s548_s9 = sphi %s575_s9, %s12_s9  }
   0x2   : > { %p121_p1 = scmp.lt.s32.totalorder %s548_s9, 3 }
   0x4   : > { %p122_p2 = pnand %p487_p0, %p121_p1 }
   0x5   : > { %p146_p3 = scmp.lt.s32.totalorder (!%p122_p2), %s483_s10, 1  ;;  %s550_s19 = smov (!%p122_p2), 96  }
   0x6   : > { %125 = sbr.rel (%p122_p2) target bundleno = 1080 (0x438), region = 28  ;;  %s551_s20 = smov (!%p122_p2), 112  }
   0x7   : > { %s552_s21 = smov (!%p122_p2), 104   ;;  %s553_s22 = smov (!%p122_p2), 120  }
   0x8   : > { %s554_s23 = smov (!%p122_p2), 88   ;;  %s555_s24 = smov (!%p122_p2), 80  }
   0x9   : > { %s556_s25 = smov (!%p122_p2), 72   ;;  %s557_s26 = smov (!%p122_p2), 8  }
   0xa   : > { %s558_s27 = smov (!%p122_p2), 24   ;;  %s559_s28 = smov (!%p122_p2), 16  }
   0xb   : > { %s645_s10 = smov (!%p146_p3, %s483_s10), 1  ;;  %vm168_vm0 = vcmask 64512   ;;  %vm189_vm1 = vcmask 97280   ;;  %vm207_vm2 = vcmask 1045504   ;;  %vm411_vm3 = vcmask 130048  }
   0xc   : > { %s506_s11 = sshll.u32 %s645_s10, 3  ;;  %s488_s15 = sshll.u32 %s645_s10, 2  ;;  %vm413_vm4 = vcmask 195584   ;;  %vm416_vm5 = vcmask 257024  }
   0xd   : > { %s154_s14 = scalar_lea.vmem %s642_s1, %s506_s11  ;;  %s149_s18 = scalar_lea.vmem %s641_s0, %s488_s15 }
   0xe   : > { %v494_v0 = vld [vmem:[%s154_s14] sm:$0xf]  ;;  %v507_v1 = vld [vmem:[%s154_s14] sm:$0x30]  ;;  %s158_s3 = scalar_lea.vmem %s643_s2, %s488_s15 }
   0xf   : > { %v589_v2 = vor.u32 %v507_v1, %v494_v0  ;;  %v160_v4 = vld [vmem:[%s149_s18] sm:$0xf] }
  0x10   : > { %v225_v5 = vunpack.c.l.b16 %v160_v4 }
  0x11   : > { %v173_v3 = vsel %vm168_vm0, %v589_v2, 0  ;;  %202 = vrot.lane.b32.xlu2 %v589_v2, %s550_s19 }
  0x12   : > { %182 = vmatpush.bf16.xpose.msra.mxu0 %v173_v3  ;;  %v226_v6 = vpack.c.b16 %v225_v5, %v225_v5 }
  0x19   : > { %496 = vmatmul.msk.bf16.vlgmr.msra.gmra.mxu0 %vm168_vm0, %v160_v4  ;;  %286 = vrot.lane.b32.xlu2 %v589_v2, %s551_s20 }
  0x21   : > { %343 = vrot.lane.b32.xlu2 %v589_v2, %s552_s21 }
  0x29   : > { %284 = vrot.lane.b32.xlu2 %v226_v6, %s551_s20 }
  0x6b   : > { %v203_v11 = vpop.permute.xlu2 %202 }
  0x6c   : > { %v209_v22 = vsel %vm207_vm2, %v203_v11, 0 }
  0x6d   : > { %218 = vmatpush.bf16.msra.mxu1 %v209_v22 }
  0x73   : > { %v287_v12 = vpop.permute.xlu2 %286 }
  0x74   : > { %v292_v23 = vsel %vm168_vm0, %v287_v12, 0 }
  0x75   : > { %301 = vmatpush.bf16.xpose.msrb.mxu1 %v292_v23 }
  0x7b   : > { %v344_v16 = vpop.permute.xlu2 %343 }
  0x7c   : > { %v349_v17 = vsel %vm168_vm0, %v344_v16, 0 }
  0x7d   : > { %358 = vmatpush.bf16.xpose.msrb.mxu0 %v349_v17 }
  0x83   : > { %v285_v30 = vpop.permute.xlu2 %284 }
  0x96   : > { %v184_v7 = vpop.f32.mrf.mxu0 }
  0x97   : > { %v188_v8 = vmul.f32 0.35355338, %v184_v7 }
  0x99   : > { %v190_v9 = vsel %vm189_vm1, %v188_v8, -inf }
  0x9a   : > { %191 = vmax.xlane.f32.xlu0 %v190_v9 }
  0x9e   : > { %v186_v10 = vpop.f32.mrf.mxu0 }
  0xae   : > { %229 = vrot.lane.b32.xlu0 %v589_v2, %s553_s22 }
  0xb6   : > { %341 = vrot.lane.b32.xlu0 %v226_v6, %s552_s21 }
 0x10d   : > { %v192_v13 = vpop.xlane.xlu0 %191 }
 0x10e   : > { %v193_v14 = vsub.f32 %v188_v8, %v192_v13 }
 0x110   : > { %v194_v15 = vmul.f32 1.442695, %v193_v14 }
 0x112   : > { %526 = vpow2.f32 %v194_v15 }
 0x118   : > { %v527_v18 = vpop.eup %526 }
 0x119   : > { %v196_v19 = vsel %vm189_vm1, %v527_v18, 0.0 }
 0x11a   : > { %197 = vadd.xlane.f32.xlu1 %v196_v19 }
 0x120   : > { %v230_v20 = vpop.permute.xlu0 %229 }
 0x121   : > { %v235_v24 = vsel %vm168_vm0, %v230_v20, 0 }
 0x122   : > { %244 = vmatpush.bf16.xpose.msra.mxu2 %v235_v24 }
 0x128   : > { %v342_v21 = vpop.permute.xlu0 %341 }
 0x129   : > { %502 = vmatmul.msk.bf16.vlgmr.msrb.gmra.mxu0 %vm168_vm0, %v342_v21 }
 0x133   : > { %227 = vrot.lane.b32.xlu1 %v226_v6, %s553_s22 }
 0x18d   : > { %v198_v25 = vpop.xlane.xlu1 %197 }
 0x18e   : > { %528 = vrcp.f32 %v198_v25 }
 0x194   : > { %v529_v26 = vpop.eup %528 }
 0x195   : > { %v200_v27 = vmul.f32 %v529_v26, %v527_v18 }
 0x197   : > { %v201_v28 = vpack.c.bf16 %v200_v27, %v200_v27 }
 0x199   : > { %497 = vmatmul.msk.bf16.vlgmr.msra.gmra.mxu1 %vm189_vm1, %v201_v28 }
 0x1a5   : > { %v228_v29 = vpop.permute.xlu1 %227 }
 0x1a6   : > { %498 = vmatmul.msk.bf16.vlgmr.msra.gmra.mxu2 %vm168_vm0, %v228_v29  ;;  %v360_v31 = vpop.f32.mrf.mxu0 }
 0x1a7   : > { %v364_v32 = vmul.f32 0.35355338, %v360_v31 }
 0x1a9   : > { %500 = vmatmul.msk.bf16.vlgmr.msrb.gmra.mxu1 %vm168_vm0, %v285_v30  ;;  %v365_v33 = vsel %vm189_vm1, %v364_v32, -inf }
 0x1aa   : > { %366 = vmax.xlane.f32.xlu0 %v365_v33 }
 0x1ae   : > { %v362_v34 = vpop.f32.mrf.mxu0 }
 0x216   : > { %v615_v35 = vpop.f32.mrf.mxu1 }
 0x21d   : > { %v367_v47 = vpop.xlane.xlu0 %366 }
 0x21e   : > { %v222_v36 = vpop.f32.mrf.mxu1  ;;  %v368_v51 = vsub.f32 %v364_v32, %v367_v47 }
 0x220   : > { %v369_v53 = vmul.f32 1.442695, %v368_v51 }
 0x226   : > { %v303_v37 = vpop.f32.mrf.mxu1 }
 0x227   : > { %v307_v38 = vmul.f32 0.35355338, %v303_v37 }
 0x229   : > { %v246_v39 = vpop.f32.mrf.mxu2  ;;  %v308_v40 = vsel %vm189_vm1, %v307_v38, -inf }
 0x22a   : > { %v250_v41 = vmul.f32 0.35355338, %v246_v39  ;;  %309 = vmax.xlane.f32.xlu1 %v308_v40 }
 0x22c   : > { %v251_v42 = vsel %vm189_vm1, %v250_v41, -inf }
 0x22d   : > { %252 = vmax.xlane.f32.xlu2 %v251_v42 }
 0x22e   : > { %v305_v43 = vpop.f32.mrf.mxu1 }
 0x231   : > { %v248_v44 = vpop.f32.mrf.mxu2 }
 0x243   : > { %263 = vrot.lane.b32.xlu1 %v589_v2, %s554_s23 }
 0x29d   : > { %v310_v45 = vpop.xlane.xlu1 %309 }
 0x29e   : > { %v311_v46 = vsub.f32 %v307_v38, %v310_v45 }
 0x2a0   : > { %v312_v48 = vmul.f32 1.442695, %v311_v46  ;;  %v253_v49 = vpop.xlane.xlu2 %252 }
 0x2a1   : > { %v254_v50 = vsub.f32 %v250_v41, %v253_v49 }
 0x2a2   : > { %530 = vpow2.f32 %v312_v48 }
 0x2a3   : > { %v255_v52 = vmul.f32 1.442695, %v254_v50 }
 0x2a5   : > { %532 = vpow2.f32 %v255_v52 }
 0x2a6   : > { %534 = vpow2.f32 %v369_v53 }
 0x2a8   : > { %v531_v54 = vpop.eup %530 }
 0x2a9   : > { %v314_v55 = vsel %vm189_vm1, %v531_v54, 0.0 }
 0x2aa   : > { %315 = vadd.xlane.f32.xlu0 %v314_v55 }
 0x2ab   : > { %v533_v56 = vpop.eup %532 }
 0x2ac   : > { %v257_v57 = vsel %vm189_vm1, %v533_v56, 0.0  ;;  %v535_v58 = vpop.eup %534 }
 0x2ad   : > { %258 = vadd.xlane.f32.xlu2 %v257_v57  ;;  %v371_v59 = vsel %vm189_vm1, %v535_v58, 0.0 }
 0x2b5   : > { %372 = vadd.xlane.f32.xlu2 %v371_v59  ;;  %v264_v60 = vpop.permute.xlu1 %263 }
 0x2b6   : > { %v269_v61 = vsel %vm207_vm2, %v264_v60, 0 }
 0x2b7   : > { %278 = vmatpush.bf16.msra.mxu3 %v269_v61 }
 0x2be   : > { %320 = vrot.lane.b32.xlu0 %v589_v2, %s555_s24 }
 0x2cd   : > { %377 = vrot.lane.b32.xlu2 %v589_v2, %s556_s25 }
 0x31d   : > { %v316_v0 = vpop.xlane.xlu0 %315 }
 0x320   : > { %v259_v62 = vpop.xlane.xlu2 %258 }
 0x321   : > { %536 = vrcp.f32 %v259_v62 }
 0x327   : > { %v537_v63 = vpop.eup %536 }
 0x328   : > { %v373_v1 = vpop.xlane.xlu2 %372  ;;  %v261_v3 = vmul.f32 %v537_v63, %v533_v56 }
 0x329   : > { %538 = vrcp.f32 %v373_v1 }
 0x32a   : > { %v262_v4 = vpack.c.bf16 %v261_v3, %v261_v3  ;;  %540 = vrcp.f32 %v316_v0 }
 0x32c   : > { %499 = vmatmul.msk.bf16.vlgmr.msra.gmra.mxu3 %vm189_vm1, %v262_v4 }
 0x32f   : > { %v539_v5 = vpop.eup %538 }
 0x330   : > { %v375_v6 = vmul.f32 %v539_v5, %v535_v58  ;;  %v378_v7 = vpop.permute.xlu2 %377  ;;  %v321_v8 = vpop.permute.xlu0 %320 }
 0x331   : > { %v326_v2 = vsel %vm207_vm2, %v321_v8, 0  ;;  %v383_v9 = vsel %vm207_vm2, %v378_v7, 0  ;;  %v541_v11 = vpop.eup %540 }
 0x332   : > { %335 = vmatpush.bf16.msrb.mxu3 %v326_v2  ;;  %392 = vmatpush.bf16.msrb.mxu2 %v383_v9  ;;  %v376_v10 = vpack.c.bf16 %v375_v6, %v375_v6  ;;  %v318_v12 = vmul.f32 %v541_v11, %v531_v54 }
 0x334   : > { %v319_v13 = vpack.c.bf16 %v318_v12, %v318_v12 }
 0x335   : > { %503 = vmatmul.msk.bf16.vlgmr.msrb.gmra.mxu2 %vm189_vm1, %v376_v10 }
 0x33c   : > { %501 = vmatmul.msk.bf16.vlgmr.msrb.gmra.mxu3 %vm189_vm1, %v319_v13 }
 0x3af   : > { %v280_v14 = vpop.f32.mrf.mxu3 }
 0x3b0   : > { %399 = vrot.lane.b32.xlu1 %v280_v14, %s557_s26 }
 0x3b7   : > { %v282_v15 = vpop.f32.mrf.mxu3 }
 0x3b8   : > { %v394_v16 = vpop.f32.mrf.mxu2 }
 0x3b9   : > { %407 = vrot.lane.b32.xlu1 %v394_v16, %s558_s27 }
 0x3bf   : > { %v337_v17 = vpop.f32.mrf.mxu3 }
 0x3c0   : > { %v396_v18 = vpop.f32.mrf.mxu2  ;;  %403 = vrot.lane.b32.xlu0 %v337_v17, %s559_s28 }
 0x3c7   : > { %v339_v19 = vpop.f32.mrf.mxu3 }
 0x422   : > { %v400_v20 = vpop.permute.xlu1 %399 }
 0x423   : > { %v410_v21 = vsel %vm168_vm0, %v615_v35, %v400_v20 }
 0x42b   : > { %v408_v23 = vpop.permute.xlu1 %407 }
 0x432   : > { %v404_v22 = vpop.permute.xlu0 %403 }
 0x433   : > { %v412_v24 = vsel %vm411_vm3, %v410_v21, %v404_v22 }
 0x434   : > { %v414_v25 = vsel %vm413_vm4, %v412_v24, %v408_v23 }
 0x435   : > { %v415_v26 = vpack.c.bf16 %v414_v25, %v414_v25 }
 0x437   : > { %417 = vst.msk [vmem:[%s158_s3] sm:$0xf] %vm416_vm5, %v415_v26 }
 0x438 PF: > { %s12_s9 = sadd.s32 1, %s548_s9  }
 0x439   : > { %p9_p4 = scmp.ge.s32.totalorder %s12_s9, 4  }
 0x43b   :  { %11 = sbr.rel (!%p9_p4) target bundleno = 1 (0x1), region = 61 }

// kernel: decoder_forward.27
= control target key start
LH: loop header
LB: loop body
LE: loop exit
PB: predicated region body
PF: predicated region fallthrough
CT: control target
= control target key end

     0   :  { %vm28_vm0 = vcmask 261120   ;;  %v225_v1 = vmov 0.0   ;;  %vm72_vm1 = vcmask 523264   ;;  %v226_v24 = vmov 32.0   ;;  %s303_s1 = inlined_call_operand.vmem [shape: bf16[64,32], index: 1, kind: input, shape index: {}]   ;;  %s304_s0 = inlined_call_operand.vmem [shape: bf16[16,64], index: 0, kind: input, shape index: {}]   ;;  %s305_s2 = inlined_call_operand.vmem [shape: f32[1,32], index: 2, kind: input, shape index: {}]   ;;  %s306_s3 = inlined_call_operand.vmem [shape: bf16[16,32], index: 3, kind: input, shape index: {}]   ;;  %s307_s4 = inlined_call_operand.vmem [shape: f32[1,32], index: 4, kind: input, shape index: {}]   ;;  %s308_s5 = inlined_call_operand.vmem [shape: f32[1,32], index: 5, kind: input, shape index: {}]   ;;  %s309_s6 = inlined_call_operand.vmem [shape: bf16[16,32], index: 6, kind: output, shape index: {}]  }
   0x1   :  { %v209_v0 = vld [vmem:[%s303_s1 + $0x18] sm:$0xff]  ;;  %29 = vst.msk [vmem:[#allocation2] sm:$0xff] %vm28_vm0, %v225_v1  ;;  %v208_v2 = vld [vmem:[%s303_s1 + $0x10] sm:$0xff]  ;;  %v207_v3 = vld [vmem:[%s303_s1 + $0x8] sm:$0xff]  ;;  %219 = vrcp.f32 %v226_v24  ;;  %vm177_vm7 = vcmask 257024  }
   0x2   :  { %30 = vst.msk [vmem:[#allocation2 + $0x8] sm:$0xff] %vm28_vm0, %v225_v1  ;;  %80 = vmatpush.bf16.msra.mxu0 %v209_v0  ;;  %v206_v4 = vld [vmem:[%s303_s1] sm:$0xff] }
   0x3   :  { %v205_v5 = vld [vmem:[%s304_s0] sm:$0xff] }
   0x4   :  { %v211_v10 = vld [vmem:[%s306_s3] sm:$0xff]  }
   0x5   :  { %v216_v11 = vld [vmem:[%s305_s2] ss:$0 sm:$0xff]  ;;  %v212_v14 = vunpack.c.l.bf16 %v211_v10  ;;  %v213_v19 = vunpack.c.h.bf16 %v211_v10 }
   0x6   :  { %81 = vmatpush.bf16.msra.mxu0 %v208_v2  ;;  %v217_v55 = vld [vmem:[%s307_s4] ss:$0 sm:$0xff] }
   0x7   :  { %v220_v25 = vpop.eup %219  ;;  %v218_v58 = vld [vmem:[%s308_s5] ss:$0 sm:$0xff] }
   0x8   :  { %v31_v6 = vld [vmem:[#allocation2] sm:$0xff]  ;;  %v119_v26 = vmul.f32 32.0, %v220_v25  ;;  %vm123_vm2 = vweird.f32 %v220_v25 }
   0x9   :  { %v32_v9 = vld [vmem:[#allocation2 + $0x8] sm:$0xff] }
   0xa   :  { %82 = vmatpush.bf16.msra.mxu0 %v207_v3  ;;  %v120_v27 = vsub.f32 1.0, %v119_v26 }
   0xc   :  { %v121_v28 = vmul.f32 %v220_v25, %v120_v27 }
   0xe   :  { %83 = vmatpush.bf16.msra.mxu0 %v206_v4  ;;  %v122_v29 = vadd.f32 %v220_v25, %v121_v28 }
  0x10   :  { %v124_v30 = vsel %vm123_vm2, %v220_v25, %v122_v29 }
  0x11   :  { %204 = vmatmul.msk.bf16.vlgmr.msra.gmra.mxu0 %vm72_vm1, %v205_v5 }
  0x8e   :  { %v85_v7 = vpop.f32.mrf.mxu0 }
  0x8f   :  { %v90_v8 = vadd.f32 %v85_v7, %v31_v6 }
  0x91   :  { %93 = vst.msk [vmem:[#allocation2] sm:$0xff] %vm28_vm0, %v90_v8 }
  0x96   :  { %v87_v12 = vpop.f32.mrf.mxu0 }
  0x97   :  { %v91_v13 = vadd.f32 %v87_v12, %v32_v9 }
  0x98   :  { %v98_v15 = vld [vmem:[#allocation2] sm:$0xff] }
  0x99   :  { %94 = vst.msk [vmem:[#allocation2 + $0x8] sm:$0xff] %vm28_vm0, %v91_v13  ;;  %v104_v16 = vadd.f32 %v216_v11, %v98_v15 }
  0x9b   :  { %v110_v17 = vadd.f32 %v212_v14, %v104_v16 }
  0x9d   :  { %v112_v18 = vsel %vm28_vm0, %v110_v17, 0.0 }
  0x9e   :  { %113 = vadd.xlane.f32.xlu0 %v112_v18 }
  0xa0   :  { %v99_v20 = vld [vmem:[#allocation2 + $0x8] sm:$0xff] }
  0xa1   :  { %v105_v21 = vadd.f32 %v216_v11, %v99_v20 }
  0xa3   :  { %v111_v22 = vadd.f32 %v213_v19, %v105_v21 }
  0xa5   :  { %v115_v23 = vsel %vm28_vm0, %v111_v22, 0.0 }
  0xa6   :  { %116 = vadd.xlane.f32.xlu0 %v115_v23 }
 0x111   :  { %v114_v31 = vpop.xlane.xlu0 %113 }
 0x112   :  { %v125_v32 = vmul.f32 %v124_v30, %v114_v31 }
 0x114   :  { %v127_v33 = vsub.f32 %v110_v17, %v125_v32 }
 0x116   :  { %v129_v34 = vmul.f32 %v127_v33, %v127_v33 }
 0x118   :  { %v131_v35 = vsel %vm28_vm0, %v129_v34, 0.0 }
 0x119   :  { %132 = vadd.xlane.f32.xlu1 %v131_v35  ;;  %v117_v36 = vpop.xlane.xlu0 %116 }
 0x11a   :  { %v126_v37 = vmul.f32 %v124_v30, %v117_v36 }
 0x11c   :  { %v128_v38 = vsub.f32 %v111_v22, %v126_v37 }
 0x11e   :  { %v130_v39 = vmul.f32 %v128_v38, %v128_v38 }
 0x120   :  { %v134_v40 = vsel %vm28_vm0, %v130_v39, 0.0 }
 0x121   :  { %135 = vadd.xlane.f32.xlu1 %v134_v40 }
 0x18c   :  { %v133_v41 = vpop.xlane.xlu1 %132 }
 0x18d   :  { %v137_v42 = vmul.f32 %v133_v41, %v124_v30 }
 0x18f   :  { %v139_v43 = vadd.f32 1e-05, %v137_v42 }
 0x191   :  { %221 = vrsqrt.f32 %v139_v43  ;;  %vm147_vm4 = vweird.f32 %v139_v43 }
 0x194   :  { %v136_v44 = vpop.xlane.xlu1 %135 }
 0x195   :  { %v138_v45 = vmul.f32 %v136_v44, %v124_v30 }
 0x197   :  { %v222_v46 = vpop.eup %221  ;;  %v140_v47 = vadd.f32 1e-05, %v138_v45 }
 0x198   :  { %v142_v48 = vmul.f32 %v222_v46, %v139_v43  ;;  %vm148_vm3 = vweird.f32 %v222_v46 }
 0x199   :  { %223 = vrsqrt.f32 %v140_v47  ;;  %vm149_vm5 = vmor %vm147_vm4, %vm148_vm3  ;;  %vm157_vm8 = vweird.f32 %v140_v47 }
 0x19a   :  { %v143_v49 = vmul.f32 %v222_v46, %v142_v48 }
 0x19c   :  { %v144_v50 = vmul.f32 0.5, %v143_v49 }
 0x19e   :  { %v145_v51 = vsub.f32 1.5, %v144_v50 }
 0x19f   :  { %v224_v52 = vpop.eup %223 }
 0x1a0   :  { %v146_v53 = vmul.f32 %v222_v46, %v145_v51  ;;  %v152_v54 = vmul.f32 %v224_v52, %v140_v47  ;;  %vm158_vm6 = vweird.f32 %v224_v52 }
 0x1a1   :  { %vm159_vm9 = vmor %vm157_vm8, %vm158_vm6 }
 0x1a2   :  { %v150_v56 = vsel %vm149_vm5, %v222_v46, %v146_v53  ;;  %v153_v57 = vmul.f32 %v224_v52, %v152_v54 }
 0x1a3   :  { %v161_v59 = vmul.f32 %v150_v56, %v127_v33 }
 0x1a4   :  { %v154_v60 = vmul.f32 0.5, %v153_v57 }
 0x1a5   :  { %v167_v61 = vmul.f32 %v217_v55, %v161_v59 }
 0x1a6   :  { %v155_v62 = vsub.f32 1.5, %v154_v60 }
 0x1a7   :  { %v173_v63 = vadd.f32 %v218_v58, %v167_v61 }
 0x1a8   :  { %v156_v0 = vmul.f32 %v224_v52, %v155_v62 }
 0x1a9   :  { %v175_v1 = vpack.c.bf16 %v173_v63, %v173_v63 }
 0x1aa   :  { %v160_v2 = vsel %vm159_vm9, %v224_v52, %v156_v0 }
 0x1ab   :  { %178 = vst.msk [vmem:[%s309_s6] sm:$0xf] %vm177_vm7, %v175_v1  ;;  %v162_v3 = vmul.f32 %v160_v2, %v128_v38 }
 0x1ad   :  { %v168_v4 = vmul.f32 %v217_v55, %v162_v3 }
 0x1af   :  { %v174_v5 = vadd.f32 %v218_v58, %v168_v4 }
 0x1b1   :  { %v176_v6 = vpack.c.bf16 %v174_v5, %v174_v5 }
 0x1b3   :  { %179 = vst.msk [vmem:[%s309_s6 + $0x4] sm:$0xf] %vm177_vm7, %v176_v6 }

// kernel: decoder_forward.37
= control target key start
LH: loop header
LB: loop body
LE: loop exit
PB: predicated region body
PF: predicated region fallthrough
CT: control target
= control target key end

     0   :  { %vm20_vm0 = vcmask 408576   ;;  %v149_v1 = vmov 0.0   ;;  %s194_s0 = inlined_call_operand.vmem [shape: bf16[16,32], index: 0, kind: input, shape index: {}]   ;;  %s195_s1 = inlined_call_operand.vmem [shape: bf16[32,50], index: 1, kind: input, shape index: {}]   ;;  %s196_s2 = inlined_call_operand.vmem [shape: f32[1,50], index: 2, kind: input, shape index: {}]   ;;  %s197_s3 = inlined_call_operand.hbm [shape: f32[16,50], index: 3, kind: output, shape index: {}]  }
   0x1   :  { %v117_v0 = vld [vmem:[%s195_s1 + $0x8] sm:$0xff]  ;;  %21 = vst.msk [vmem:[#allocation2] sm:$0xff] %vm20_vm0, %v149_v1 }
   0x2   :  { %8 = vsyncpa [#allocation4], 0  ;;  %58 = vmatpush.bf16.msra.mxu0 %v117_v0  ;;  %v116_v2 = vld [vmem:[%s195_s1] sm:$0xff]  ;;  %22 = vst.msk [vmem:[#allocation2 + $0x8] sm:$0xff] %vm20_vm0, %v149_v1  ;;  %vm48_vm1 = vcmask 261120   ;;  %s90_s22 = sshll.u32 %s197_s3, 4  ;;  %s91_s22 = int_to_ptr.hbm [resolvable:$true] %s90_s22 }
   0x3   :  { %v115_v3 = vld [vmem:[%s194_s0] sm:$0xff]  ;;  %s150_s0 = smov [#allocation3]   ;;  %s152_s23 = smov 8  }
   0x4   :  { %v122_v8 = vld [vmem:[%s196_s2] ss:$0 sm:$0xff]  ;;  %s88_s1 = sshll.u32 %s150_s0, 4  ;;  %s151_s2 = smov 128   ;;  %s89_s1 = int_to_ptr.vmem [resolvable:$true] %s88_s1 }
   0x6   :  { %59 = vmatpush.bf16.msra.mxu0 %v116_v2 }
   0x8   :  { %v23_v4 = vld [vmem:[#allocation2] sm:$0xff] }
   0x9   :  { %114 = vmatmul.msk.bf16.vlgmr.msra.gmra.mxu0 %vm48_vm1, %v115_v3  ;;  %v24_v7 = vld [vmem:[#allocation2 + $0x8] sm:$0xff] }
  0x86   :  { %v61_v5 = vpop.f32.mrf.mxu0 }
  0x87   :  { %v66_v6 = vadd.f32 %v61_v5, %v23_v4 }
  0x89   :  { %69 = vst.msk [vmem:[#allocation2] sm:$0xff] %vm20_vm0, %v66_v6 }
  0x8e   :  { %v63_v9 = vpop.f32.mrf.mxu0 }
  0x8f   :  { %v67_v10 = vadd.f32 %v63_v9, %v24_v7 }
  0x90   :  { %v74_v11 = vld [vmem:[#allocation2] sm:$0xff] }
  0x91   :  { %70 = vst.msk [vmem:[#allocation2 + $0x8] sm:$0xff] %vm20_vm0, %v67_v10  ;;  %v80_v12 = vadd.f32 %v122_v8, %v74_v11 }
  0x93   :  { %82 = vst.msk [vmem:[#allocation3] sm:$0xff] %vm20_vm0, %v80_v12 }
  0x98   :  { %v75_v13 = vld [vmem:[#allocation2 + $0x8] sm:$0xff] }
  0x99   :  { %v81_v14 = vadd.f32 %v122_v8, %v75_v13 }
  0x9b   :  { %83 = vst.msk [vmem:[#allocation3 + $0x8] sm:$0xff] %vm20_vm0, %v81_v14 }
  0x9c   :  { %96 = dma.vmem_to_hbm [thread:$0]  %s89_s1, 256, %s91_s22, [#allocation4], %s151_s2, %s151_s2, %s152_s23  }
  0x9d   :  { %147 = dma.done.wait [#allocation4], 256  }
  0x9e   :  { %148 = vsyncadd [#allocation4], 4294967040 }
  0x9f   :  { %101 = vsyncpa [#allocation4], 1 }

</bundles_post_ra>
